<compile_context>
chip_gen: v7x
topology: tpu7x:2x2x1
jax: 0.10.0
libtpu: 0.0.40
codegen_flags: <defaults>
</compile_context>

<pallas_src>
import functools

import jax
import jax.numpy as jnp
from jax.experimental import pallas as pl
from jax.experimental.pallas import tpu as pltpu


# --------------------------------------------------------------------------- #
# VMEM sizing helpers (review items: v7x 64 MiB budget / v6e scoped default).  #
# --------------------------------------------------------------------------- #
def _estimate_vmem_bytes(TT, BB, D, H, cbytes):
    """Rough per-core VMEM footprint of one grid step (single-buffered weights)."""
    x_blk = 2 * TT * BB * D * cbytes                      # double-buffered x block
    weights = (D + H) * 4 * H * cbytes + (4 * H + H) * 4  # W_ih^T, W_hh^T, biases, head
    xproj = TT * BB * 4 * H * 4                           # f32 block projection
    state = 2 * BB * H * 4                                # h, c
    logits = TT * BB * 4                                  # per-block logits
    out_blk = 2 * TT * BB * 4                             # double-buffered output
    return x_blk + weights + xproj + state + logits + out_blk


def _vmem_budget_bytes():
    # Conservative default fits v7x's 64 MiB physical VMEM with headroom for
    # Mosaic internal scratch; raise toward 96 MiB on 128 MiB parts if known.
    budget = 44 << 20
    try:
        cap = pltpu.get_tpu_info().vmem_capacity_bytes
        budget = min(int(cap * 0.7), 96 << 20)
    except Exception:
        pass
    return budget


def _pick_time_block(T, BB, D, H, cbytes):
    budget = _vmem_budget_bytes()
    for TT in range(T, 0, -1):          # biggest legal block that fits
        if T % TT:
            continue
        if TT != T and TT % 8 != 0:     # (8, 128) block-shape rule
            continue
        if _estimate_vmem_bytes(TT, BB, D, H, cbytes) <= budget:
            return TT
    for TT in range(8, T + 1, 8):       # nothing fit: smallest legal block
        if T % TT == 0:
            return TT
    return T


# --------------------------------------------------------------------------- #
# Kernel                                                                       #
# --------------------------------------------------------------------------- #
def _lstm_disc_kernel(x_ref, wih_ref, whh_ref, b_ref, wl_ref, bl_ref,
                      out_ref, h_sc, c_sc, xproj_sc, logit_sc,
                      *, hidden_dim, batch_block, time_block):
    """One grid step == one (batch_block, time_block) tile of the sequence."""
    tb = pl.program_id(1)                      # time-block index ("arbitrary")
    H, BB, TT = hidden_dim, batch_block, time_block

    # h_0 = c_0 = 0 (matches torch.zeros in forward()).  Scratch persists
    # across the sequential time-block axis, so reset only at the first block.
    @pl.when(tb == 0)
    def _():
        h_sc[...] = jnp.zeros_like(h_sc)
        c_sc[...] = jnp.zeros_like(c_sc)

    # --- (1) Block input projection: ONE MXU matmul + bias per block --------
    # Rows are time-major within the batch tile: row = t * BB + b.
    xproj_sc[...] = (
        jnp.dot(x_ref[0], wih_ref[...], preferred_element_type=jnp.float32)
        + b_ref[...])                                        # (TT*BB, 4H)

    # Hoist the resident operands out of the serial loop.
    whh = whh_ref[...]                                       # (H, 4H)
    wl = wl_ref[...]                                         # (1, H)

    # --- (2) Recurrent sweep -------------------------------------------------
    # Only the small h @ W_hh^T matmul and VPU/EUP cell math sit on the serial
    # critical path.  The Linear(H, 1) head is folded in as an XLU lane-reduce
    # (idle slot), so no (TT*BB, H) hidden stash is needed.
    def step(t, carry):
        h, c = carry
        row = pl.multiple_of(t * BB, BB)
        gates = (xproj_sc[pl.ds(row, BB), :]
                 + jnp.dot(h.astype(whh.dtype), whh,
                           preferred_element_type=jnp.float32))   # (BB, 4H)
        # PyTorch gate order: input, forget, cell(g), output
        i_g = jax.nn.sigmoid(gates[:, 0 * H:1 * H])
        f_g = jax.nn.sigmoid(gates[:, 1 * H:2 * H])
        g_g = jnp.tanh(gates[:, 2 * H:3 * H])
        o_g = jax.nn.sigmoid(gates[:, 3 * H:4 * H])
        c = f_g * c + i_g * g_g
        h = o_g * jnp.tanh(c)
        logit_sc[t, :] = jnp.sum(h * wl, axis=-1)            # head (bias later)
        return h, c

    h_last, c_last = jax.lax.fori_loop(
        0, TT, step, (h_sc[...], c_sc[...]), unroll=min(TT, 8))
    h_sc[...] = h_last
    c_sc[...] = c_last

    # --- (3) Head bias + Sigmoid: single per-block store ---------------------
    out_ref[0] = jax.nn.sigmoid(logit_sc[...] + bl_ref[0, 0])


# --------------------------------------------------------------------------- #
# Wrapper                                                                      #
# --------------------------------------------------------------------------- #
def lstm_discriminator_forward(x, params, *, time_block=None, batch_block=None,
                               compute_dtype=jnp.bfloat16):
    """x: (batch, seq_len, in_dim) float32 -> (batch, seq_len, 1) float32."""
    B, T, D = x.shape
    w_ih, w_hh, b_ih, b_hh, w_lin, b_lin = (
        params["w_ih"], params["w_hh"], params["b_ih"], params["b_hh"],
        params["w_lin"], params["b_lin"])
    H = w_hh.shape[1]

    BB = B if batch_block is None else int(batch_block)
    assert B % BB == 0, "batch must be divisible by batch_block"
    n_btiles = B // BB

    cbytes = jnp.dtype(compute_dtype).itemsize
    TT = (_pick_time_block(T, BB, D, H, cbytes) if time_block is None
          else int(time_block))
    assert T % TT == 0, "seq_len must be divisible by time_block"
    assert TT == T or TT % 8 == 0, \
        "time_block must cover the sequence or be a multiple of 8"
    n_blocks = T // TT

    # MXU operands in compute_dtype (bf16 default: native MXU precision on
    # v5e/v6e/v7x, half the x HBM traffic / weight VMEM); accumulation is f32.
    wih_t = w_ih.T.astype(compute_dtype)                          # (D, 4H)
    whh_t = w_hh.T.astype(compute_dtype)                          # (H, 4H)
    bias = (b_ih + b_hh).reshape(1, 4 * H).astype(jnp.float32)    # (1, 4H)
    wl = w_lin.reshape(1, H).astype(jnp.float32)                  # (1, H)
    bl = b_lin.reshape(1, 1).astype(jnp.float32)                  # (1, 1) SMEM

    # (B, T, D) -> (n_btiles, T*BB, D): time-major within each batch tile so
    # the per-block input projection is a plain 2-D matmul (row = t*BB + b).
    # x is small (D = in_dim), so this extra XLA pass is cheap vs the recurrence.
    # TODO(synk): consume x natively via allow_input_fusion once verified to fuse.
    x_tm = (x.astype(compute_dtype)
             .reshape(n_btiles, BB, T, D)
             .transpose(0, 2, 1, 3)
             .reshape(n_btiles, T * BB, D))

    kernel = functools.partial(_lstm_disc_kernel, hidden_dim=H,
                               batch_block=BB, time_block=TT)

    est = _estimate_vmem_bytes(TT, BB, D, H, cbytes)
    cp_kwargs = dict(dimension_semantics=("parallel", "arbitrary"))
    if est > (28 << 20):   # only raise the scoped VMEM limit when needed
        cp_kwargs["vmem_limit_bytes"] = int(min(est + (16 << 20), 100 << 20))
    compiler_params = pltpu.CompilerParams(**cp_kwargs)

    def call(single_buffer_weights):
        def const_spec(shape):
            kw = {}
            if single_buffer_weights:
                # Constant index map -> never re-fetched; one buffer is enough.
                kw["pipeline_mode"] = pl.Buffered(1)
            return pl.BlockSpec(shape, lambda bt, tb: (0,) * len(shape), **kw)

        return pl.pallas_call(
            kernel,
            out_shape=jax.ShapeDtypeStruct((n_btiles, T, BB), jnp.float32),
            grid_spec=pltpu.PrefetchScalarGridSpec(
                num_scalar_prefetch=0,
                grid=(n_btiles, n_blocks),
                in_specs=[
                    pl.BlockSpec((1, TT * BB, D), lambda bt, tb: (bt, tb, 0)),
                    const_spec((D, 4 * H)),        # W_ih^T   (resident)
                    const_spec((H, 4 * H)),        # W_hh^T   (resident)
                    const_spec((1, 4 * H)),        # combined gate bias
                    const_spec((1, H)),            # head weight row
                    pl.BlockSpec(memory_space=pltpu.MemorySpace.SMEM),  # head b
                ],
                out_specs=pl.BlockSpec((1, TT, BB), lambda bt, tb: (bt, tb, 0)),
                scratch_shapes=[
                    pltpu.VMEM((BB, H), jnp.float32),            # h state
                    pltpu.VMEM((BB, H), jnp.float32),            # c state
                    pltpu.VMEM((TT * BB, 4 * H), jnp.float32),   # block x-projection
                    pltpu.VMEM((TT, BB), jnp.float32),           # per-step logits
                ],
            ),
            compiler_params=compiler_params,
        )(x_tm, wih_t, whh_t, bias, wl, bl)

    try:
        out = call(single_buffer_weights=True)
    except Exception:
        # pipeline_mode=pl.Buffered(1) not accepted by this jax build; fall back
        # to default double-buffered constant blocks (correctness unchanged).
        out = call(single_buffer_weights=False)

    # (n_btiles, T, BB) -> (B, T, 1): pure layout plumbing outside the kernel.
    return jnp.transpose(out, (0, 2, 1)).reshape(B, T)[..., None]


# --------------------------------------------------------------------------- #
# Params / reference                                                           #
# --------------------------------------------------------------------------- #
def init_params(key, in_dim, hidden_dim):
    """Deterministic init mimicking PyTorch's U(-1/sqrt(H), 1/sqrt(H))."""
    ks = jax.random.split(key, 6)
    bound = 1.0 / jnp.sqrt(hidden_dim).astype(jnp.float32)

    def u(k, shape):
        return jax.random.uniform(k, shape, jnp.float32, -bound, bound)

    return {
        "w_ih": u(ks[0], (4 * hidden_dim, in_dim)),
        "w_hh": u(ks[1], (4 * hidden_dim, hidden_dim)),
        "b_ih": u(ks[2], (4 * hidden_dim,)),
        "b_hh": u(ks[3], (4 * hidden_dim,)),
        "w_lin": u(ks[4], (1, hidden_dim)),
        "b_lin": u(ks[5], (1,)),
    }


def _reference_forward(x, params):
    """Pure-JAX reference (lax.scan) matching torch LSTM semantics."""
    B, T, D = x.shape
    H = params["w_hh"].shape[1]
    wih_t = params["w_ih"].T
    whh_t = params["w_hh"].T
    bias = params["b_ih"] + params["b_hh"]

    def step(carry, x_t):
        h, c = carry
        gates = x_t @ wih_t + h @ whh_t + bias
        i = jax.nn.sigmoid(gates[:, 0 * H:1 * H])
        f = jax.nn.sigmoid(gates[:, 1 * H:2 * H])
        g = jnp.tanh(gates[:, 2 * H:3 * H])
        o = jax.nn.sigmoid(gates[:, 3 * H:4 * H])
        c = f * c + i * g
        h = o * jnp.tanh(c)
        return (h, c), h

    h0 = jnp.zeros((B, H), jnp.float32)
    c0 = jnp.zeros((B, H), jnp.float32)
    _, hs = jax.lax.scan(step, (h0, c0), jnp.transpose(x, (1, 0, 2)))
    hs = jnp.transpose(hs, (1, 0, 2))                        # (B, T, H)
    logits = hs @ params["w_lin"].T + params["b_lin"]
    return jax.nn.sigmoid(logits)                            # (B, T, 1)


if __name__ == "__main__":
    # Small shapes consistent with the module (batch_first sequences).
    batch, seq_len, in_dim, hidden_dim = 4, 8, 8, 32

    key = jax.random.PRNGKey(0)
    k_x, k_p = jax.random.split(key)
    x = jax.random.normal(k_x, (batch, seq_len, in_dim), jnp.float32)
    params = init_params(k_p, in_dim, hidden_dim)
    ref = _reference_forward(x, params)

    # f32 MXU operands: tight check vs the pure-JAX reference.
    out_f32 = jax.block_until_ready(
        lstm_discriminator_forward(x, params, compute_dtype=jnp.float32))
    assert out_f32.shape == (batch, seq_len, 1)
    assert jnp.allclose(out_f32, ref, atol=1e-5, rtol=1e-5), "f32 mismatch"

    # Default bf16 MXU operands (f32 accumulate / cell math): looser tolerance.
    out_bf16 = jax.block_until_ready(lstm_discriminator_forward(x, params))
    assert out_bf16.shape == (batch, seq_len, 1)
    assert jnp.allclose(out_bf16, ref, atol=5e-2), "bf16 mismatch"

    # Multi-time-block path (grid > 1 on the sequential axis, h/c carried in
    # scratch across blocks), f32 path, slightly larger shapes.
    x2 = jax.random.normal(jax.random.PRNGKey(1), (8, 32, in_dim), jnp.float32)
    params2 = init_params(jax.random.PRNGKey(2), in_dim, 64)
    ref2 = _reference_forward(x2, params2)
    out2 = jax.block_until_ready(
        lstm_discriminator_forward(x2, params2, time_block=8,
                                   compute_dtype=jnp.float32))
    assert out2.shape == (8, 32, 1)
    assert jnp.allclose(out2, ref2, atol=1e-5, rtol=1e-5), "blocked mismatch"

    # Batch-tiled path: leading "parallel" grid axis (v7x dual-TensorCore shape).
    out3 = jax.block_until_ready(
        lstm_discriminator_forward(x2, params2, time_block=8, batch_block=4,
                                   compute_dtype=jnp.float32))
    assert jnp.allclose(out3, ref2, atol=1e-5, rtol=1e-5), "batch-tiled mismatch"

    print("KERNEL_OK")
</pallas_src>

<mosaic_0001>
module attributes {stable_mosaic.version = 11 : i64} {
  func.func @_lstm_disc_kernel(%arg0: i32, %arg1: i32, %arg2: memref<1x32x8xf32, #tpu.memory_space<vmem>>, %arg3: memref<8x128xf32, #tpu.memory_space<vmem>>, %arg4: memref<32x128xf32, #tpu.memory_space<vmem>>, %arg5: memref<1x128xf32, #tpu.memory_space<vmem>>, %arg6: memref<1x32xf32, #tpu.memory_space<vmem>>, %arg7: memref<1x1xf32, #tpu.memory_space<smem>>, %arg8: memref<1x8x4xf32, #tpu.memory_space<vmem>>, %arg9: memref<4x32xf32, #tpu.memory_space<vmem>>, %arg10: memref<4x32xf32, #tpu.memory_space<vmem>>, %arg11: memref<32x128xf32, #tpu.memory_space<vmem>>, %arg12: memref<8x4xf32, #tpu.memory_space<vmem>>) attributes {dimension_semantics = [#tpu.dimension_semantics<parallel>, #tpu.dimension_semantics<arbitrary>], iteration_bounds = array<i64: 1, 1>, scalar_prefetch = 0 : i64, scratch_operands = 4 : i64, tpu.core_type = #tpu.core_type<tc>, window_params = [{transform_indices = @transform_0, window_bounds = array<i64: 1, 32, 8>}, {pipeline_mode = #tpu.pipeline_mode<synchronous>, transform_indices = @transform_1, window_bounds = array<i64: 8, 128>}, {pipeline_mode = #tpu.pipeline_mode<synchronous>, transform_indices = @transform_2, window_bounds = array<i64: 32, 128>}, {pipeline_mode = #tpu.pipeline_mode<synchronous>, transform_indices = @transform_3, window_bounds = array<i64: 1, 128>}, {pipeline_mode = #tpu.pipeline_mode<synchronous>, transform_indices = @transform_4, window_bounds = array<i64: 1, 32>}, {transform_indices = @transform_5, window_bounds = array<i64: 1, 1>}, {transform_indices = @transform_6, window_bounds = array<i64: 1, 8, 4>}]} {
    %c0_i32 = arith.constant 0 : i32
    %0 = arith.cmpi eq, %arg1, %c0_i32 : i32
    %1 = arith.extui %0 : i1 to i32
    %c0_i32_0 = arith.constant 0 : i32
    %2 = arith.cmpi ne, %1, %c0_i32_0 : i32
    scf.if %2 {
      %cst_94 = arith.constant 0.000000e+00 : f32
      %333 = vector.broadcast %cst_94 : f32 to vector<4x32xf32>
      %c0_95 = arith.constant 0 : index
      %c0_96 = arith.constant 0 : index
      %334 = vector.load %arg9[%c0_95, %c0_96] : memref<4x32xf32, #tpu.memory_space<vmem>>, vector<4x32xf32>
      tpu.vector_store %arg9[%c0_95, %c0_96], %333 {strides = array<i32>} : memref<4x32xf32, #tpu.memory_space<vmem>>, vector<4x32xf32>,
      %cst_97 = arith.constant 0.000000e+00 : f32
      %335 = vector.broadcast %cst_97 : f32 to vector<4x32xf32>
      %c0_98 = arith.constant 0 : index
      %c0_99 = arith.constant 0 : index
      %336 = vector.load %arg10[%c0_98, %c0_99] : memref<4x32xf32, #tpu.memory_space<vmem>>, vector<4x32xf32>
      tpu.vector_store %arg10[%c0_98, %c0_99], %335 {strides = array<i32>} : memref<4x32xf32, #tpu.memory_space<vmem>>, vector<4x32xf32>,
    } else {
    }
    %c0 = arith.constant 0 : index
    %c0_1 = arith.constant 0 : index
    %c0_2 = arith.constant 0 : index
    %3 = vector.load %arg2[%c0, %c0_1, %c0_2] : memref<1x32x8xf32, #tpu.memory_space<vmem>>, vector<1x32x8xf32>
    %4 = vector.shape_cast %3 : vector<1x32x8xf32> to vector<32x8xf32>
    %c0_3 = arith.constant 0 : index
    %c0_4 = arith.constant 0 : index
    %5 = vector.load %arg3[%c0_3, %c0_4] : memref<8x128xf32, #tpu.memory_space<vmem>>, vector<8x128xf32>
    %cst = arith.constant dense<0.000000e+00> : vector<32x128xf32>
    %6 = tpu.matmul %4, %5, %cst {dimension_numbers = #tpu.dot_dimension_numbers<[1], [0], [0], [1], [0, 0, 1, 1], [], []>} : vector<32x8xf32>, vector<8x128xf32>, vector<32x128xf32> -> vector<32x128xf32>
    %c0_5 = arith.constant 0 : index
    %c0_6 = arith.constant 0 : index
    %7 = vector.load %arg5[%c0_5, %c0_6] : memref<1x128xf32, #tpu.memory_space<vmem>>, vector<1x128xf32>
    %8 = vector.broadcast %7 : vector<1x128xf32> to vector<32x128xf32>
    %9 = arith.addf %6, %8 : vector<32x128xf32>
    %c0_7 = arith.constant 0 : index
    %c0_8 = arith.constant 0 : index
    %10 = vector.load %arg11[%c0_7, %c0_8] : memref<32x128xf32, #tpu.memory_space<vmem>>, vector<32x128xf32>
    tpu.vector_store %arg11[%c0_7, %c0_8], %9 {strides = array<i32>} : memref<32x128xf32, #tpu.memory_space<vmem>>, vector<32x128xf32>,
    %c0_9 = arith.constant 0 : index
    %c0_10 = arith.constant 0 : index
    %11 = vector.load %arg4[%c0_9, %c0_10] : memref<32x128xf32, #tpu.memory_space<vmem>>, vector<32x128xf32>
    %c0_11 = arith.constant 0 : index
    %c0_12 = arith.constant 0 : index
    %12 = vector.load %arg6[%c0_11, %c0_12] : memref<1x32xf32, #tpu.memory_space<vmem>>, vector<1x32xf32>
    %c0_13 = arith.constant 0 : index
    %c0_14 = arith.constant 0 : index
    %13 = vector.load %arg9[%c0_13, %c0_14] : memref<4x32xf32, #tpu.memory_space<vmem>>, vector<4x32xf32>
    %c0_15 = arith.constant 0 : index
    %c0_16 = arith.constant 0 : index
    %14 = vector.load %arg10[%c0_15, %c0_16] : memref<4x32xf32, #tpu.memory_space<vmem>>, vector<4x32xf32>
    %c0_i32_17 = arith.constant 0 : i32
    %c4_i32 = arith.constant 4 : i32
    %15 = arith.muli %c0_i32_17, %c4_i32 : i32
    %16 = tpu.assume_multiple %15, 4 : i32
    %17 = arith.index_cast %16 : i32 to index
    %c0_18 = arith.constant 0 : index
    %18 = vector.load %arg11[%17, %c0_18] : memref<32x128xf32, #tpu.memory_space<vmem>>, vector<4x128xf32>
    %cst_19 = arith.constant dense<0.000000e+00> : vector<4x128xf32>
    %19 = tpu.matmul %13, %11, %cst_19 {dimension_numbers = #tpu.dot_dimension_numbers<[1], [0], [0], [1], [0, 0, 1, 1], [], []>} : vector<4x32xf32>, vector<32x128xf32>, vector<4x128xf32> -> vector<4x128xf32>
    %20 = arith.addf %18, %19 : vector<4x128xf32>
    %21 = vector.extract_strided_slice %20 {offsets = [0, 0], sizes = [4, 32], strides = [1, 1]} : vector<4x128xf32> to vector<4x32xf32>
    %22 = arith.negf %21 : vector<4x32xf32>
    %23 = math.exp %22 : vector<4x32xf32>
    %cst_20 = arith.constant 1.000000e+00 : f32
    %24 = vector.broadcast %cst_20 : f32 to vector<4x32xf32>
    %25 = arith.addf %24, %23 : vector<4x32xf32>
    %26 = arith.divf %24, %25 : vector<4x32xf32>
    %27 = vector.extract_strided_slice %20 {offsets = [0, 32], sizes = [4, 32], strides = [1, 1]} : vector<4x128xf32> to vector<4x32xf32>
    %28 = arith.negf %27 : vector<4x32xf32>
    %29 = math.exp %28 : vector<4x32xf32>
    %cst_21 = arith.constant 1.000000e+00 : f32
    %30 = vector.broadcast %cst_21 : f32 to vector<4x32xf32>
    %31 = arith.addf %30, %29 : vector<4x32xf32>
    %32 = arith.divf %30, %31 : vector<4x32xf32>
    %33 = vector.extract_strided_slice %20 {offsets = [0, 64], sizes = [4, 32], strides = [1, 1]} : vector<4x128xf32> to vector<4x32xf32>
    %34 = math.tanh %33 : vector<4x32xf32>
    %35 = vector.extract_strided_slice %20 {offsets = [0, 96], sizes = [4, 32], strides = [1, 1]} : vector<4x128xf32> to vector<4x32xf32>
    %36 = arith.negf %35 : vector<4x32xf32>
    %37 = math.exp %36 : vector<4x32xf32>
    %cst_22 = arith.constant 1.000000e+00 : f32
    %38 = vector.broadcast %cst_22 : f32 to vector<4x32xf32>
    %39 = arith.addf %38, %37 : vector<4x32xf32>
    %40 = arith.divf %38, %39 : vector<4x32xf32>
    %41 = arith.mulf %32, %14 : vector<4x32xf32>
    %42 = arith.mulf %26, %34 : vector<4x32xf32>
    %43 = arith.addf %41, %42 : vector<4x32xf32>
    %44 = math.tanh %43 : vector<4x32xf32>
    %45 = arith.mulf %40, %44 : vector<4x32xf32>
    %46 = vector.broadcast %12 : vector<1x32xf32> to vector<4x32xf32>
    %47 = arith.mulf %45, %46 : vector<4x32xf32>
    %cst_23 = arith.constant dense<0.000000e+00> : vector<4xf32>
    %48 = vector.multi_reduction <add>, %47, %cst_23 [1] : vector<4x32xf32> to vector<4xf32>
    %49 = arith.index_cast %c0_i32_17 : i32 to index
    %c0_24 = arith.constant 0 : index
    %50 = vector.load %arg12[%49, %c0_24] : memref<8x4xf32, #tpu.memory_space<vmem>>, vector<1x4xf32>
    %51 = vector.shape_cast %50 : vector<1x4xf32> to vector<4xf32>
    %52 = vector.shape_cast %48 : vector<4xf32> to vector<1x4xf32>
    tpu.vector_store %arg12[%49, %c0_24], %52 {strides = array<i32>} : memref<8x4xf32, #tpu.memory_space<vmem>>, vector<1x4xf32>,
    %c1_i32 = arith.constant 1 : i32
    %c4_i32_25 = arith.constant 4 : i32
    %53 = arith.muli %c1_i32, %c4_i32_25 : i32
    %54 = tpu.assume_multiple %53, 4 : i32
    %55 = arith.index_cast %54 : i32 to index
    %c0_26 = arith.constant 0 : index
    %56 = vector.load %arg11[%55, %c0_26] : memref<32x128xf32, #tpu.memory_space<vmem>>, vector<4x128xf32>
    %cst_27 = arith.constant dense<0.000000e+00> : vector<4x128xf32>
    %57 = tpu.matmul %45, %11, %cst_27 {dimension_numbers = #tpu.dot_dimension_numbers<[1], [0], [0], [1], [0, 0, 1, 1], [], []>} : vector<4x32xf32>, vector<32x128xf32>, vector<4x128xf32> -> vector<4x128xf32>
    %58 = arith.addf %56, %57 : vector<4x128xf32>
    %59 = vector.extract_strided_slice %58 {offsets = [0, 0], sizes = [4, 32], strides = [1, 1]} : vector<4x128xf32> to vector<4x32xf32>
    %60 = arith.negf %59 : vector<4x32xf32>
    %61 = math.exp %60 : vector<4x32xf32>
    %cst_28 = arith.constant 1.000000e+00 : f32
    %62 = vector.broadcast %cst_28 : f32 to vector<4x32xf32>
    %63 = arith.addf %62, %61 : vector<4x32xf32>
    %64 = arith.divf %62, %63 : vector<4x32xf32>
    %65 = vector.extract_strided_slice %58 {offsets = [0, 32], sizes = [4, 32], strides = [1, 1]} : vector<4x128xf32> to vector<4x32xf32>
    %66 = arith.negf %65 : vector<4x32xf32>
    %67 = math.exp %66 : vector<4x32xf32>
    %cst_29 = arith.constant 1.000000e+00 : f32
    %68 = vector.broadcast %cst_29 : f32 to vector<4x32xf32>
    %69 = arith.addf %68, %67 : vector<4x32xf32>
    %70 = arith.divf %68, %69 : vector<4x32xf32>
    %71 = vector.extract_strided_slice %58 {offsets = [0, 64], sizes = [4, 32], strides = [1, 1]} : vector<4x128xf32> to vector<4x32xf32>
    %72 = math.tanh %71 : vector<4x32xf32>
    %73 = vector.extract_strided_slice %58 {offsets = [0, 96], sizes = [4, 32], strides = [1, 1]} : vector<4x128xf32> to vector<4x32xf32>
    %74 = arith.negf %73 : vector<4x32xf32>
    %75 = math.exp %74 : vector<4x32xf32>
    %cst_30 = arith.constant 1.000000e+00 : f32
    %76 = vector.broadcast %cst_30 : f32 to vector<4x32xf32>
    %77 = arith.addf %76, %75 : vector<4x32xf32>
    %78 = arith.divf %76, %77 : vector<4x32xf32>
    %79 = arith.mulf %70, %43 : vector<4x32xf32>
    %80 = arith.mulf %64, %72 : vector<4x32xf32>
    %81 = arith.addf %79, %80 : vector<4x32xf32>
    %82 = math.tanh %81 : vector<4x32xf32>
    %83 = arith.mulf %78, %82 : vector<4x32xf32>
    %84 = vector.broadcast %12 : vector<1x32xf32> to vector<4x32xf32>
    %85 = arith.mulf %83, %84 : vector<4x32xf32>
    %cst_31 = arith.constant dense<0.000000e+00> : vector<4xf32>
    %86 = vector.multi_reduction <add>, %85, %cst_31 [1] : vector<4x32xf32> to vector<4xf32>
    %87 = arith.index_cast %c1_i32 : i32 to index
    %c0_32 = arith.constant 0 : index
    %88 = vector.load %arg12[%87, %c0_32] : memref<8x4xf32, #tpu.memory_space<vmem>>, vector<1x4xf32>
    %89 = vector.shape_cast %88 : vector<1x4xf32> to vector<4xf32>
    %90 = vector.shape_cast %86 : vector<4xf32> to vector<1x4xf32>
    tpu.vector_store %arg12[%87, %c0_32], %90 {strides = array<i32>} : memref<8x4xf32, #tpu.memory_space<vmem>>, vector<1x4xf32>,
    %c2_i32 = arith.constant 2 : i32
    %c4_i32_33 = arith.constant 4 : i32
    %91 = arith.muli %c2_i32, %c4_i32_33 : i32
    %92 = tpu.assume_multiple %91, 4 : i32
    %93 = arith.index_cast %92 : i32 to index
    %c0_34 = arith.constant 0 : index
    %94 = vector.load %arg11[%93, %c0_34] : memref<32x128xf32, #tpu.memory_space<vmem>>, vector<4x128xf32>
    %cst_35 = arith.constant dense<0.000000e+00> : vector<4x128xf32>
    %95 = tpu.matmul %83, %11, %cst_35 {dimension_numbers = #tpu.dot_dimension_numbers<[1], [0], [0], [1], [0, 0, 1, 1], [], []>} : vector<4x32xf32>, vector<32x128xf32>, vector<4x128xf32> -> vector<4x128xf32>
    %96 = arith.addf %94, %95 : vector<4x128xf32>
    %97 = vector.extract_strided_slice %96 {offsets = [0, 0], sizes = [4, 32], strides = [1, 1]} : vector<4x128xf32> to vector<4x32xf32>
    %98 = arith.negf %97 : vector<4x32xf32>
    %99 = math.exp %98 : vector<4x32xf32>
    %cst_36 = arith.constant 1.000000e+00 : f32
    %100 = vector.broadcast %cst_36 : f32 to vector<4x32xf32>
    %101 = arith.addf %100, %99 : vector<4x32xf32>
    %102 = arith.divf %100, %101 : vector<4x32xf32>
    %103 = vector.extract_strided_slice %96 {offsets = [0, 32], sizes = [4, 32], strides = [1, 1]} : vector<4x128xf32> to vector<4x32xf32>
    %104 = arith.negf %103 : vector<4x32xf32>
    %105 = math.exp %104 : vector<4x32xf32>
    %cst_37 = arith.constant 1.000000e+00 : f32
    %106 = vector.broadcast %cst_37 : f32 to vector<4x32xf32>
    %107 = arith.addf %106, %105 : vector<4x32xf32>
    %108 = arith.divf %106, %107 : vector<4x32xf32>
    %109 = vector.extract_strided_slice %96 {offsets = [0, 64], sizes = [4, 32], strides = [1, 1]} : vector<4x128xf32> to vector<4x32xf32>
    %110 = math.tanh %109 : vector<4x32xf32>
    %111 = vector.extract_strided_slice %96 {offsets = [0, 96], sizes = [4, 32], strides = [1, 1]} : vector<4x128xf32> to vector<4x32xf32>
    %112 = arith.negf %111 : vector<4x32xf32>
    %113 = math.exp %112 : vector<4x32xf32>
    %cst_38 = arith.constant 1.000000e+00 : f32
    %114 = vector.broadcast %cst_38 : f32 to vector<4x32xf32>
    %115 = arith.addf %114, %113 : vector<4x32xf32>
    %116 = arith.divf %114, %115 : vector<4x32xf32>
    %117 = arith.mulf %108, %81 : vector<4x32xf32>
    %118 = arith.mulf %102, %110 : vector<4x32xf32>
    %119 = arith.addf %117, %118 : vector<4x32xf32>
    %120 = math.tanh %119 : vector<4x32xf32>
    %121 = arith.mulf %116, %120 : vector<4x32xf32>
    %122 = vector.broadcast %12 : vector<1x32xf32> to vector<4x32xf32>
    %123 = arith.mulf %121, %122 : vector<4x32xf32>
    %cst_39 = arith.constant dense<0.000000e+00> : vector<4xf32>
    %124 = vector.multi_reduction <add>, %123, %cst_39 [1] : vector<4x32xf32> to vector<4xf32>
    %125 = arith.index_cast %c2_i32 : i32 to index
    %c0_40 = arith.constant 0 : index
    %126 = vector.load %arg12[%125, %c0_40] : memref<8x4xf32, #tpu.memory_space<vmem>>, vector<1x4xf32>
    %127 = vector.shape_cast %126 : vector<1x4xf32> to vector<4xf32>
    %128 = vector.shape_cast %124 : vector<4xf32> to vector<1x4xf32>
    tpu.vector_store %arg12[%125, %c0_40], %128 {strides = array<i32>} : memref<8x4xf32, #tpu.memory_space<vmem>>, vector<1x4xf32>,
    %c3_i32 = arith.constant 3 : i32
    %c4_i32_41 = arith.constant 4 : i32
    %129 = arith.muli %c3_i32, %c4_i32_41 : i32
    %130 = tpu.assume_multiple %129, 4 : i32
    %131 = arith.index_cast %130 : i32 to index
    %c0_42 = arith.constant 0 : index
    %132 = vector.load %arg11[%131, %c0_42] : memref<32x128xf32, #tpu.memory_space<vmem>>, vector<4x128xf32>
    %cst_43 = arith.constant dense<0.000000e+00> : vector<4x128xf32>
    %133 = tpu.matmul %121, %11, %cst_43 {dimension_numbers = #tpu.dot_dimension_numbers<[1], [0], [0], [1], [0, 0, 1, 1], [], []>} : vector<4x32xf32>, vector<32x128xf32>, vector<4x128xf32> -> vector<4x128xf32>
    %134 = arith.addf %132, %133 : vector<4x128xf32>
    %135 = vector.extract_strided_slice %134 {offsets = [0, 0], sizes = [4, 32], strides = [1, 1]} : vector<4x128xf32> to vector<4x32xf32>
    %136 = arith.negf %135 : vector<4x32xf32>
    %137 = math.exp %136 : vector<4x32xf32>
    %cst_44 = arith.constant 1.000000e+00 : f32
    %138 = vector.broadcast %cst_44 : f32 to vector<4x32xf32>
    %139 = arith.addf %138, %137 : vector<4x32xf32>
    %140 = arith.divf %138, %139 : vector<4x32xf32>
    %141 = vector.extract_strided_slice %134 {offsets = [0, 32], sizes = [4, 32], strides = [1, 1]} : vector<4x128xf32> to vector<4x32xf32>
    %142 = arith.negf %141 : vector<4x32xf32>
    %143 = math.exp %142 : vector<4x32xf32>
    %cst_45 = arith.constant 1.000000e+00 : f32
    %144 = vector.broadcast %cst_45 : f32 to vector<4x32xf32>
    %145 = arith.addf %144, %143 : vector<4x32xf32>
    %146 = arith.divf %144, %145 : vector<4x32xf32>
    %147 = vector.extract_strided_slice %134 {offsets = [0, 64], sizes = [4, 32], strides = [1, 1]} : vector<4x128xf32> to vector<4x32xf32>
    %148 = math.tanh %147 : vector<4x32xf32>
    %149 = vector.extract_strided_slice %134 {offsets = [0, 96], sizes = [4, 32], strides = [1, 1]} : vector<4x128xf32> to vector<4x32xf32>
    %150 = arith.negf %149 : vector<4x32xf32>
    %151 = math.exp %150 : vector<4x32xf32>
    %cst_46 = arith.constant 1.000000e+00 : f32
    %152 = vector.broadcast %cst_46 : f32 to vector<4x32xf32>
    %153 = arith.addf %152, %151 : vector<4x32xf32>
    %154 = arith.divf %152, %153 : vector<4x32xf32>
    %155 = arith.mulf %146, %119 : vector<4x32xf32>
    %156 = arith.mulf %140, %148 : vector<4x32xf32>
    %157 = arith.addf %155, %156 : vector<4x32xf32>
    %158 = math.tanh %157 : vector<4x32xf32>
    %159 = arith.mulf %154, %158 : vector<4x32xf32>
    %160 = vector.broadcast %12 : vector<1x32xf32> to vector<4x32xf32>
    %161 = arith.mulf %159, %160 : vector<4x32xf32>
    %cst_47 = arith.constant dense<0.000000e+00> : vector<4xf32>
    %162 = vector.multi_reduction <add>, %161, %cst_47 [1] : vector<4x32xf32> to vector<4xf32>
    %163 = arith.index_cast %c3_i32 : i32 to index
    %c0_48 = arith.constant 0 : index
    %164 = vector.load %arg12[%163, %c0_48] : memref<8x4xf32, #tpu.memory_space<vmem>>, vector<1x4xf32>
    %165 = vector.shape_cast %164 : vector<1x4xf32> to vector<4xf32>
    %166 = vector.shape_cast %162 : vector<4xf32> to vector<1x4xf32>
    tpu.vector_store %arg12[%163, %c0_48], %166 {strides = array<i32>} : memref<8x4xf32, #tpu.memory_space<vmem>>, vector<1x4xf32>,
    %c4_i32_49 = arith.constant 4 : i32
    %c4_i32_50 = arith.constant 4 : i32
    %167 = arith.muli %c4_i32_49, %c4_i32_50 : i32
    %168 = tpu.assume_multiple %167, 4 : i32
    %169 = arith.index_cast %168 : i32 to index
    %c0_51 = arith.constant 0 : index
    %170 = vector.load %arg11[%169, %c0_51] : memref<32x128xf32, #tpu.memory_space<vmem>>, vector<4x128xf32>
    %cst_52 = arith.constant dense<0.000000e+00> : vector<4x128xf32>
    %171 = tpu.matmul %159, %11, %cst_52 {dimension_numbers = #tpu.dot_dimension_numbers<[1], [0], [0], [1], [0, 0, 1, 1], [], []>} : vector<4x32xf32>, vector<32x128xf32>, vector<4x128xf32> -> vector<4x128xf32>
    %172 = arith.addf %170, %171 : vector<4x128xf32>
    %173 = vector.extract_strided_slice %172 {offsets = [0, 0], sizes = [4, 32], strides = [1, 1]} : vector<4x128xf32> to vector<4x32xf32>
    %174 = arith.negf %173 : vector<4x32xf32>
    %175 = math.exp %174 : vector<4x32xf32>
    %cst_53 = arith.constant 1.000000e+00 : f32
    %176 = vector.broadcast %cst_53 : f32 to vector<4x32xf32>
    %177 = arith.addf %176, %175 : vector<4x32xf32>
    %178 = arith.divf %176, %177 : vector<4x32xf32>
    %179 = vector.extract_strided_slice %172 {offsets = [0, 32], sizes = [4, 32], strides = [1, 1]} : vector<4x128xf32> to vector<4x32xf32>
    %180 = arith.negf %179 : vector<4x32xf32>
    %181 = math.exp %180 : vector<4x32xf32>
    %cst_54 = arith.constant 1.000000e+00 : f32
    %182 = vector.broadcast %cst_54 : f32 to vector<4x32xf32>
    %183 = arith.addf %182, %181 : vector<4x32xf32>
    %184 = arith.divf %182, %183 : vector<4x32xf32>
    %185 = vector.extract_strided_slice %172 {offsets = [0, 64], sizes = [4, 32], strides = [1, 1]} : vector<4x128xf32> to vector<4x32xf32>
    %186 = math.tanh %185 : vector<4x32xf32>
    %187 = vector.extract_strided_slice %172 {offsets = [0, 96], sizes = [4, 32], strides = [1, 1]} : vector<4x128xf32> to vector<4x32xf32>
    %188 = arith.negf %187 : vector<4x32xf32>
    %189 = math.exp %188 : vector<4x32xf32>
    %cst_55 = arith.constant 1.000000e+00 : f32
    %190 = vector.broadcast %cst_55 : f32 to vector<4x32xf32>
    %191 = arith.addf %190, %189 : vector<4x32xf32>
    %192 = arith.divf %190, %191 : vector<4x32xf32>
    %193 = arith.mulf %184, %157 : vector<4x32xf32>
    %194 = arith.mulf %178, %186 : vector<4x32xf32>
    %195 = arith.addf %193, %194 : vector<4x32xf32>
    %196 = math.tanh %195 : vector<4x32xf32>
    %197 = arith.mulf %192, %196 : vector<4x32xf32>
    %198 = vector.broadcast %12 : vector<1x32xf32> to vector<4x32xf32>
    %199 = arith.mulf %197, %198 : vector<4x32xf32>
    %cst_56 = arith.constant dense<0.000000e+00> : vector<4xf32>
    %200 = vector.multi_reduction <add>, %199, %cst_56 [1] : vector<4x32xf32> to vector<4xf32>
    %201 = arith.index_cast %c4_i32_49 : i32 to index
    %c0_57 = arith.constant 0 : index
    %202 = vector.load %arg12[%201, %c0_57] : memref<8x4xf32, #tpu.memory_space<vmem>>, vector<1x4xf32>
    %203 = vector.shape_cast %202 : vector<1x4xf32> to vector<4xf32>
    %204 = vector.shape_cast %200 : vector<4xf32> to vector<1x4xf32>
    tpu.vector_store %arg12[%201, %c0_57], %204 {strides = array<i32>} : memref<8x4xf32, #tpu.memory_space<vmem>>, vector<1x4xf32>,
    %c5_i32 = arith.constant 5 : i32
    %c4_i32_58 = arith.constant 4 : i32
    %205 = arith.muli %c5_i32, %c4_i32_58 : i32
    %206 = tpu.assume_multiple %205, 4 : i32
    %207 = arith.index_cast %206 : i32 to index
    %c0_59 = arith.constant 0 : index
    %208 = vector.load %arg11[%207, %c0_59] : memref<32x128xf32, #tpu.memory_space<vmem>>, vector<4x128xf32>
    %cst_60 = arith.constant dense<0.000000e+00> : vector<4x128xf32>
    %209 = tpu.matmul %197, %11, %cst_60 {dimension_numbers = #tpu.dot_dimension_numbers<[1], [0], [0], [1], [0, 0, 1, 1], [], []>} : vector<4x32xf32>, vector<32x128xf32>, vector<4x128xf32> -> vector<4x128xf32>
    %210 = arith.addf %208, %209 : vector<4x128xf32>
    %211 = vector.extract_strided_slice %210 {offsets = [0, 0], sizes = [4, 32], strides = [1, 1]} : vector<4x128xf32> to vector<4x32xf32>
    %212 = arith.negf %211 : vector<4x32xf32>
    %213 = math.exp %212 : vector<4x32xf32>
    %cst_61 = arith.constant 1.000000e+00 : f32
    %214 = vector.broadcast %cst_61 : f32 to vector<4x32xf32>
    %215 = arith.addf %214, %213 : vector<4x32xf32>
    %216 = arith.divf %214, %215 : vector<4x32xf32>
    %217 = vector.extract_strided_slice %210 {offsets = [0, 32], sizes = [4, 32], strides = [1, 1]} : vector<4x128xf32> to vector<4x32xf32>
    %218 = arith.negf %217 : vector<4x32xf32>
    %219 = math.exp %218 : vector<4x32xf32>
    %cst_62 = arith.constant 1.000000e+00 : f32
    %220 = vector.broadcast %cst_62 : f32 to vector<4x32xf32>
    %221 = arith.addf %220, %219 : vector<4x32xf32>
    %222 = arith.divf %220, %221 : vector<4x32xf32>
    %223 = vector.extract_strided_slice %210 {offsets = [0, 64], sizes = [4, 32], strides = [1, 1]} : vector<4x128xf32> to vector<4x32xf32>
    %224 = math.tanh %223 : vector<4x32xf32>
    %225 = vector.extract_strided_slice %210 {offsets = [0, 96], sizes = [4, 32], strides = [1, 1]} : vector<4x128xf32> to vector<4x32xf32>
    %226 = arith.negf %225 : vector<4x32xf32>
    %227 = math.exp %226 : vector<4x32xf32>
    %cst_63 = arith.constant 1.000000e+00 : f32
    %228 = vector.broadcast %cst_63 : f32 to vector<4x32xf32>
    %229 = arith.addf %228, %227 : vector<4x32xf32>
    %230 = arith.divf %228, %229 : vector<4x32xf32>
    %231 = arith.mulf %222, %195 : vector<4x32xf32>
    %232 = arith.mulf %216, %224 : vector<4x32xf32>
    %233 = arith.addf %231, %232 : vector<4x32xf32>
    %234 = math.tanh %233 : vector<4x32xf32>
    %235 = arith.mulf %230, %234 : vector<4x32xf32>
    %236 = vector.broadcast %12 : vector<1x32xf32> to vector<4x32xf32>
    %237 = arith.mulf %235, %236 : vector<4x32xf32>
    %cst_64 = arith.constant dense<0.000000e+00> : vector<4xf32>
    %238 = vector.multi_reduction <add>, %237, %cst_64 [1] : vector<4x32xf32> to vector<4xf32>
    %239 = arith.index_cast %c5_i32 : i32 to index
    %c0_65 = arith.constant 0 : index
    %240 = vector.load %arg12[%239, %c0_65] : memref<8x4xf32, #tpu.memory_space<vmem>>, vector<1x4xf32>
    %241 = vector.shape_cast %240 : vector<1x4xf32> to vector<4xf32>
    %242 = vector.shape_cast %238 : vector<4xf32> to vector<1x4xf32>
    tpu.vector_store %arg12[%239, %c0_65], %242 {strides = array<i32>} : memref<8x4xf32, #tpu.memory_space<vmem>>, vector<1x4xf32>,
    %c6_i32 = arith.constant 6 : i32
    %c4_i32_66 = arith.constant 4 : i32
    %243 = arith.muli %c6_i32, %c4_i32_66 : i32
    %244 = tpu.assume_multiple %243, 4 : i32
    %245 = arith.index_cast %244 : i32 to index
    %c0_67 = arith.constant 0 : index
    %246 = vector.load %arg11[%245, %c0_67] : memref<32x128xf32, #tpu.memory_space<vmem>>, vector<4x128xf32>
    %cst_68 = arith.constant dense<0.000000e+00> : vector<4x128xf32>
    %247 = tpu.matmul %235, %11, %cst_68 {dimension_numbers = #tpu.dot_dimension_numbers<[1], [0], [0], [1], [0, 0, 1, 1], [], []>} : vector<4x32xf32>, vector<32x128xf32>, vector<4x128xf32> -> vector<4x128xf32>
    %248 = arith.addf %246, %247 : vector<4x128xf32>
    %249 = vector.extract_strided_slice %248 {offsets = [0, 0], sizes = [4, 32], strides = [1, 1]} : vector<4x128xf32> to vector<4x32xf32>
    %250 = arith.negf %249 : vector<4x32xf32>
    %251 = math.exp %250 : vector<4x32xf32>
    %cst_69 = arith.constant 1.000000e+00 : f32
    %252 = vector.broadcast %cst_69 : f32 to vector<4x32xf32>
    %253 = arith.addf %252, %251 : vector<4x32xf32>
    %254 = arith.divf %252, %253 : vector<4x32xf32>
    %255 = vector.extract_strided_slice %248 {offsets = [0, 32], sizes = [4, 32], strides = [1, 1]} : vector<4x128xf32> to vector<4x32xf32>
    %256 = arith.negf %255 : vector<4x32xf32>
    %257 = math.exp %256 : vector<4x32xf32>
    %cst_70 = arith.constant 1.000000e+00 : f32
    %258 = vector.broadcast %cst_70 : f32 to vector<4x32xf32>
    %259 = arith.addf %258, %257 : vector<4x32xf32>
    %260 = arith.divf %258, %259 : vector<4x32xf32>
    %261 = vector.extract_strided_slice %248 {offsets = [0, 64], sizes = [4, 32], strides = [1, 1]} : vector<4x128xf32> to vector<4x32xf32>
    %262 = math.tanh %261 : vector<4x32xf32>
    %263 = vector.extract_strided_slice %248 {offsets = [0, 96], sizes = [4, 32], strides = [1, 1]} : vector<4x128xf32> to vector<4x32xf32>
    %264 = arith.negf %263 : vector<4x32xf32>
    %265 = math.exp %264 : vector<4x32xf32>
    %cst_71 = arith.constant 1.000000e+00 : f32
    %266 = vector.broadcast %cst_71 : f32 to vector<4x32xf32>
    %267 = arith.addf %266, %265 : vector<4x32xf32>
    %268 = arith.divf %266, %267 : vector<4x32xf32>
    %269 = arith.mulf %260, %233 : vector<4x32xf32>
    %270 = arith.mulf %254, %262 : vector<4x32xf32>
    %271 = arith.addf %269, %270 : vector<4x32xf32>
    %272 = math.tanh %271 : vector<4x32xf32>
    %273 = arith.mulf %268, %272 : vector<4x32xf32>
    %274 = vector.broadcast %12 : vector<1x32xf32> to vector<4x32xf32>
    %275 = arith.mulf %273, %274 : vector<4x32xf32>
    %cst_72 = arith.constant dense<0.000000e+00> : vector<4xf32>
    %276 = vector.multi_reduction <add>, %275, %cst_72 [1] : vector<4x32xf32> to vector<4xf32>
    %277 = arith.index_cast %c6_i32 : i32 to index
    %c0_73 = arith.constant 0 : index
    %278 = vector.load %arg12[%277, %c0_73] : memref<8x4xf32, #tpu.memory_space<vmem>>, vector<1x4xf32>
    %279 = vector.shape_cast %278 : vector<1x4xf32> to vector<4xf32>
    %280 = vector.shape_cast %276 : vector<4xf32> to vector<1x4xf32>
    tpu.vector_store %arg12[%277, %c0_73], %280 {strides = array<i32>} : memref<8x4xf32, #tpu.memory_space<vmem>>, vector<1x4xf32>,
    %c7_i32 = arith.constant 7 : i32
    %c4_i32_74 = arith.constant 4 : i32
    %281 = arith.muli %c7_i32, %c4_i32_74 : i32
    %282 = tpu.assume_multiple %281, 4 : i32
    %283 = arith.index_cast %282 : i32 to index
    %c0_75 = arith.constant 0 : index
    %284 = vector.load %arg11[%283, %c0_75] : memref<32x128xf32, #tpu.memory_space<vmem>>, vector<4x128xf32>
    %cst_76 = arith.constant dense<0.000000e+00> : vector<4x128xf32>
    %285 = tpu.matmul %273, %11, %cst_76 {dimension_numbers = #tpu.dot_dimension_numbers<[1], [0], [0], [1], [0, 0, 1, 1], [], []>} : vector<4x32xf32>, vector<32x128xf32>, vector<4x128xf32> -> vector<4x128xf32>
    %286 = arith.addf %284, %285 : vector<4x128xf32>
    %287 = vector.extract_strided_slice %286 {offsets = [0, 0], sizes = [4, 32], strides = [1, 1]} : vector<4x128xf32> to vector<4x32xf32>
    %288 = arith.negf %287 : vector<4x32xf32>
    %289 = math.exp %288 : vector<4x32xf32>
    %cst_77 = arith.constant 1.000000e+00 : f32
    %290 = vector.broadcast %cst_77 : f32 to vector<4x32xf32>
    %291 = arith.addf %290, %289 : vector<4x32xf32>
    %292 = arith.divf %290, %291 : vector<4x32xf32>
    %293 = vector.extract_strided_slice %286 {offsets = [0, 32], sizes = [4, 32], strides = [1, 1]} : vector<4x128xf32> to vector<4x32xf32>
    %294 = arith.negf %293 : vector<4x32xf32>
    %295 = math.exp %294 : vector<4x32xf32>
    %cst_78 = arith.constant 1.000000e+00 : f32
    %296 = vector.broadcast %cst_78 : f32 to vector<4x32xf32>
    %297 = arith.addf %296, %295 : vector<4x32xf32>
    %298 = arith.divf %296, %297 : vector<4x32xf32>
    %299 = vector.extract_strided_slice %286 {offsets = [0, 64], sizes = [4, 32], strides = [1, 1]} : vector<4x128xf32> to vector<4x32xf32>
    %300 = math.tanh %299 : vector<4x32xf32>
    %301 = vector.extract_strided_slice %286 {offsets = [0, 96], sizes = [4, 32], strides = [1, 1]} : vector<4x128xf32> to vector<4x32xf32>
    %302 = arith.negf %301 : vector<4x32xf32>
    %303 = math.exp %302 : vector<4x32xf32>
    %cst_79 = arith.constant 1.000000e+00 : f32
    %304 = vector.broadcast %cst_79 : f32 to vector<4x32xf32>
    %305 = arith.addf %304, %303 : vector<4x32xf32>
    %306 = arith.divf %304, %305 : vector<4x32xf32>
    %307 = arith.mulf %298, %271 : vector<4x32xf32>
    %308 = arith.mulf %292, %300 : vector<4x32xf32>
    %309 = arith.addf %307, %308 : vector<4x32xf32>
    %310 = math.tanh %309 : vector<4x32xf32>
    %311 = arith.mulf %306, %310 : vector<4x32xf32>
    %312 = vector.broadcast %12 : vector<1x32xf32> to vector<4x32xf32>
    %313 = arith.mulf %311, %312 : vector<4x32xf32>
    %cst_80 = arith.constant dense<0.000000e+00> : vector<4xf32>
    %314 = vector.multi_reduction <add>, %313, %cst_80 [1] : vector<4x32xf32> to vector<4xf32>
    %315 = arith.index_cast %c7_i32 : i32 to index
    %c0_81 = arith.constant 0 : index
    %316 = vector.load %arg12[%315, %c0_81] : memref<8x4xf32, #tpu.memory_space<vmem>>, vector<1x4xf32>
    %317 = vector.shape_cast %316 : vector<1x4xf32> to vector<4xf32>
    %318 = vector.shape_cast %314 : vector<4xf32> to vector<1x4xf32>
    tpu.vector_store %arg12[%315, %c0_81], %318 {strides = array<i32>} : memref<8x4xf32, #tpu.memory_space<vmem>>, vector<1x4xf32>,
    %c8_i32 = arith.constant 8 : i32
    %c0_82 = arith.constant 0 : index
    %c0_83 = arith.constant 0 : index
    %319 = vector.load %arg9[%c0_82, %c0_83] : memref<4x32xf32, #tpu.memory_space<vmem>>, vector<4x32xf32>
    tpu.vector_store %arg9[%c0_82, %c0_83], %311 {strides = array<i32>} : memref<4x32xf32, #tpu.memory_space<vmem>>, vector<4x32xf32>,
    %c0_84 = arith.constant 0 : index
    %c0_85 = arith.constant 0 : index
    %320 = vector.load %arg10[%c0_84, %c0_85] : memref<4x32xf32, #tpu.memory_space<vmem>>, vector<4x32xf32>
    tpu.vector_store %arg10[%c0_84, %c0_85], %309 {strides = array<i32>} : memref<4x32xf32, #tpu.memory_space<vmem>>, vector<4x32xf32>,
    %c0_86 = arith.constant 0 : index
    %c0_87 = arith.constant 0 : index
    %321 = vector.load %arg12[%c0_86, %c0_87] : memref<8x4xf32, #tpu.memory_space<vmem>>, vector<8x4xf32>
    %c0_88 = arith.constant 0 : index
    %c0_89 = arith.constant 0 : index
    %322 = memref.load %arg7[%c0_88, %c0_89] : memref<1x1xf32, #tpu.memory_space<smem>>
    %323 = vector.broadcast %322 : f32 to vector<8x4xf32>
    %324 = arith.addf %321, %323 : vector<8x4xf32>
    %325 = arith.negf %324 : vector<8x4xf32>
    %326 = math.exp %325 : vector<8x4xf32>
    %cst_90 = arith.constant 1.000000e+00 : f32
    %327 = vector.broadcast %cst_90 : f32 to vector<8x4xf32>
    %328 = arith.addf %327, %326 : vector<8x4xf32>
    %329 = arith.divf %327, %328 : vector<8x4xf32>
    %c0_91 = arith.constant 0 : index
    %c0_92 = arith.constant 0 : index
    %c0_93 = arith.constant 0 : index
    %330 = vector.load %arg8[%c0_91, %c0_92, %c0_93] : memref<1x8x4xf32, #tpu.memory_space<vmem>>, vector<1x8x4xf32>
    %331 = vector.shape_cast %330 : vector<1x8x4xf32> to vector<8x4xf32>
    %332 = vector.shape_cast %329 : vector<8x4xf32> to vector<1x8x4xf32>
    tpu.vector_store %arg8[%c0_91, %c0_92, %c0_93], %332 {strides = array<i32>} : memref<1x8x4xf32, #tpu.memory_space<vmem>>, vector<1x8x4xf32>,
    return
  }
  func.func @transform_0(%arg0: i32, %arg1: i32) -> (i32, i32, i32) {
    %c0_i32 = arith.constant 0 : i32
    %c0_i32_0 = arith.constant 0 : i32
    return %arg0, %arg1, %c0_i32 : i32, i32, i32
  }
  func.func @transform_1(%arg0: i32, %arg1: i32) -> (i32, i32) {
    %c0_i32 = arith.constant 0 : i32
    %c0_i32_0 = arith.constant 0 : i32
    %c0_i32_1 = arith.constant 0 : i32
    return %c0_i32, %c0_i32_0 : i32, i32
  }
  func.func @transform_2(%arg0: i32, %arg1: i32) -> (i32, i32) {
    %c0_i32 = arith.constant 0 : i32
    %c0_i32_0 = arith.constant 0 : i32
    %c0_i32_1 = arith.constant 0 : i32
    return %c0_i32, %c0_i32_0 : i32, i32
  }
  func.func @transform_3(%arg0: i32, %arg1: i32) -> (i32, i32) {
    %c0_i32 = arith.constant 0 : i32
    %c0_i32_0 = arith.constant 0 : i32
    %c0_i32_1 = arith.constant 0 : i32
    return %c0_i32, %c0_i32_0 : i32, i32
  }
  func.func @transform_4(%arg0: i32, %arg1: i32) -> (i32, i32) {
    %c0_i32 = arith.constant 0 : i32
    %c0_i32_0 = arith.constant 0 : i32
    %c0_i32_1 = arith.constant 0 : i32
    return %c0_i32, %c0_i32_0 : i32, i32
  }
  func.func @transform_5(%arg0: i32, %arg1: i32) -> (i32, i32) {
    %c0_i32 = arith.constant 0 : i32
    %c0_i32_0 = arith.constant 0 : i32
    %c0_i32_1 = arith.constant 0 : i32
    return %c0_i32, %c0_i32_0 : i32, i32
  }
  func.func @transform_6(%arg0: i32, %arg1: i32) -> (i32, i32, i32) {
    %c0_i32 = arith.constant 0 : i32
    %c0_i32_0 = arith.constant 0 : i32
    return %arg0, %arg1, %c0_i32 : i32, i32, i32
  }
}

module attributes {stable_mosaic.version = 11 : i64} {
  func.func @_lstm_disc_kernel(%arg0: i32, %arg1: i32, %arg2: memref<1x32x8xf32, #tpu.memory_space<vmem>>, %arg3: memref<8x128xf32, #tpu.memory_space<vmem>>, %arg4: memref<32x128xf32, #tpu.memory_space<vmem>>, %arg5: memref<1x128xf32, #tpu.memory_space<vmem>>, %arg6: memref<1x32xf32, #tpu.memory_space<vmem>>, %arg7: memref<1x1xf32, #tpu.memory_space<smem>>, %arg8: memref<1x8x4xf32, #tpu.memory_space<vmem>>, %arg9: memref<4x32xf32, #tpu.memory_space<vmem>>, %arg10: memref<4x32xf32, #tpu.memory_space<vmem>>, %arg11: memref<32x128xf32, #tpu.memory_space<vmem>>, %arg12: memref<8x4xf32, #tpu.memory_space<vmem>>) attributes {dimension_semantics = [#tpu.dimension_semantics<parallel>, #tpu.dimension_semantics<arbitrary>], iteration_bounds = array<i64: 1, 1>, scalar_prefetch = 0 : i64, scratch_operands = 4 : i64, tpu.core_type = #tpu.core_type<tc>, window_params = [{transform_indices = @transform_0, window_bounds = array<i64: 1, 32, 8>}, {pipeline_mode = #tpu.pipeline_mode<synchronous>, transform_indices = @transform_1, window_bounds = array<i64: 8, 128>}, {pipeline_mode = #tpu.pipeline_mode<synchronous>, transform_indices = @transform_2, window_bounds = array<i64: 32, 128>}, {pipeline_mode = #tpu.pipeline_mode<synchronous>, transform_indices = @transform_3, window_bounds = array<i64: 1, 128>}, {pipeline_mode = #tpu.pipeline_mode<synchronous>, transform_indices = @transform_4, window_bounds = array<i64: 1, 32>}, {transform_indices = @transform_5, window_bounds = array<i64: 1, 1>}, {transform_indices = @transform_6, window_bounds = array<i64: 1, 8, 4>}]} {
    %c0_i32 = arith.constant 0 : i32
    %0 = arith.cmpi eq, %arg1, %c0_i32 : i32
    %1 = arith.extui %0 : i1 to i32
    %c0_i32_0 = arith.constant 0 : i32
    %2 = arith.cmpi ne, %1, %c0_i32_0 : i32
    scf.if %2 {
      %cst_94 = arith.constant 0.000000e+00 : f32
      %333 = vector.broadcast %cst_94 : f32 to vector<4x32xf32>
      %c0_95 = arith.constant 0 : index
      %c0_96 = arith.constant 0 : index
      %334 = vector.load %arg9[%c0_95, %c0_96] : memref<4x32xf32, #tpu.memory_space<vmem>>, vector<4x32xf32>
      tpu.vector_store %arg9[%c0_95, %c0_96], %333 {strides = array<i32>} : memref<4x32xf32, #tpu.memory_space<vmem>>, vector<4x32xf32>,
      %cst_97 = arith.constant 0.000000e+00 : f32
      %335 = vector.broadcast %cst_97 : f32 to vector<4x32xf32>
      %c0_98 = arith.constant 0 : index
      %c0_99 = arith.constant 0 : index
      %336 = vector.load %arg10[%c0_98, %c0_99] : memref<4x32xf32, #tpu.memory_space<vmem>>, vector<4x32xf32>
      tpu.vector_store %arg10[%c0_98, %c0_99], %335 {strides = array<i32>} : memref<4x32xf32, #tpu.memory_space<vmem>>, vector<4x32xf32>,
    } else {
    }
    %c0 = arith.constant 0 : index
    %c0_1 = arith.constant 0 : index
    %c0_2 = arith.constant 0 : index
    %3 = vector.load %arg2[%c0, %c0_1, %c0_2] : memref<1x32x8xf32, #tpu.memory_space<vmem>>, vector<1x32x8xf32>
    %4 = vector.shape_cast %3 : vector<1x32x8xf32> to vector<32x8xf32>
    %c0_3 = arith.constant 0 : index
    %c0_4 = arith.constant 0 : index
    %5 = vector.load %arg3[%c0_3, %c0_4] : memref<8x128xf32, #tpu.memory_space<vmem>>, vector<8x128xf32>
    %cst = arith.constant dense<0.000000e+00> : vector<32x128xf32>
    %6 = tpu.matmul %4, %5, %cst {dimension_numbers = #tpu.dot_dimension_numbers<[1], [0], [0], [1], [0, 0, 1, 1], [], []>} : vector<32x8xf32>, vector<8x128xf32>, vector<32x128xf32> -> vector<32x128xf32>
    %c0_5 = arith.constant 0 : index
    %c0_6 = arith.constant 0 : index
    %7 = vector.load %arg5[%c0_5, %c0_6] : memref<1x128xf32, #tpu.memory_space<vmem>>, vector<1x128xf32>
    %8 = vector.broadcast %7 : vector<1x128xf32> to vector<32x128xf32>
    %9 = arith.addf %6, %8 : vector<32x128xf32>
    %c0_7 = arith.constant 0 : index
    %c0_8 = arith.constant 0 : index
    %10 = vector.load %arg11[%c0_7, %c0_8] : memref<32x128xf32, #tpu.memory_space<vmem>>, vector<32x128xf32>
    tpu.vector_store %arg11[%c0_7, %c0_8], %9 {strides = array<i32>} : memref<32x128xf32, #tpu.memory_space<vmem>>, vector<32x128xf32>,
    %c0_9 = arith.constant 0 : index
    %c0_10 = arith.constant 0 : index
    %11 = vector.load %arg4[%c0_9, %c0_10] : memref<32x128xf32, #tpu.memory_space<vmem>>, vector<32x128xf32>
    %c0_11 = arith.constant 0 : index
    %c0_12 = arith.constant 0 : index
    %12 = vector.load %arg6[%c0_11, %c0_12] : memref<1x32xf32, #tpu.memory_space<vmem>>, vector<1x32xf32>
    %c0_13 = arith.constant 0 : index
    %c0_14 = arith.constant 0 : index
    %13 = vector.load %arg9[%c0_13, %c0_14] : memref<4x32xf32, #tpu.memory_space<vmem>>, vector<4x32xf32>
    %c0_15 = arith.constant 0 : index
    %c0_16 = arith.constant 0 : index
    %14 = vector.load %arg10[%c0_15, %c0_16] : memref<4x32xf32, #tpu.memory_space<vmem>>, vector<4x32xf32>
    %c0_i32_17 = arith.constant 0 : i32
    %c4_i32 = arith.constant 4 : i32
    %15 = arith.muli %c0_i32_17, %c4_i32 : i32
    %16 = tpu.assume_multiple %15, 4 : i32
    %17 = arith.index_cast %16 : i32 to index
    %c0_18 = arith.constant 0 : index
    %18 = vector.load %arg11[%17, %c0_18] : memref<32x128xf32, #tpu.memory_space<vmem>>, vector<4x128xf32>
    %cst_19 = arith.constant dense<0.000000e+00> : vector<4x128xf32>
    %19 = tpu.matmul %13, %11, %cst_19 {dimension_numbers = #tpu.dot_dimension_numbers<[1], [0], [0], [1], [0, 0, 1, 1], [], []>} : vector<4x32xf32>, vector<32x128xf32>, vector<4x128xf32> -> vector<4x128xf32>
    %20 = arith.addf %18, %19 : vector<4x128xf32>
    %21 = vector.extract_strided_slice %20 {offsets = [0, 0], sizes = [4, 32], strides = [1, 1]} : vector<4x128xf32> to vector<4x32xf32>
    %22 = arith.negf %21 : vector<4x32xf32>
    %23 = math.exp %22 : vector<4x32xf32>
    %cst_20 = arith.constant 1.000000e+00 : f32
    %24 = vector.broadcast %cst_20 : f32 to vector<4x32xf32>
    %25 = arith.addf %24, %23 : vector<4x32xf32>
    %26 = arith.divf %24, %25 : vector<4x32xf32>
    %27 = vector.extract_strided_slice %20 {offsets = [0, 32], sizes = [4, 32], strides = [1, 1]} : vector<4x128xf32> to vector<4x32xf32>
    %28 = arith.negf %27 : vector<4x32xf32>
    %29 = math.exp %28 : vector<4x32xf32>
    %cst_21 = arith.constant 1.000000e+00 : f32
    %30 = vector.broadcast %cst_21 : f32 to vector<4x32xf32>
    %31 = arith.addf %30, %29 : vector<4x32xf32>
    %32 = arith.divf %30, %31 : vector<4x32xf32>
    %33 = vector.extract_strided_slice %20 {offsets = [0, 64], sizes = [4, 32], strides = [1, 1]} : vector<4x128xf32> to vector<4x32xf32>
    %34 = math.tanh %33 : vector<4x32xf32>
    %35 = vector.extract_strided_slice %20 {offsets = [0, 96], sizes = [4, 32], strides = [1, 1]} : vector<4x128xf32> to vector<4x32xf32>
    %36 = arith.negf %35 : vector<4x32xf32>
    %37 = math.exp %36 : vector<4x32xf32>
    %cst_22 = arith.constant 1.000000e+00 : f32
    %38 = vector.broadcast %cst_22 : f32 to vector<4x32xf32>
    %39 = arith.addf %38, %37 : vector<4x32xf32>
    %40 = arith.divf %38, %39 : vector<4x32xf32>
    %41 = arith.mulf %32, %14 : vector<4x32xf32>
    %42 = arith.mulf %26, %34 : vector<4x32xf32>
    %43 = arith.addf %41, %42 : vector<4x32xf32>
    %44 = math.tanh %43 : vector<4x32xf32>
    %45 = arith.mulf %40, %44 : vector<4x32xf32>
    %46 = vector.broadcast %12 : vector<1x32xf32> to vector<4x32xf32>
    %47 = arith.mulf %45, %46 : vector<4x32xf32>
    %cst_23 = arith.constant dense<0.000000e+00> : vector<4xf32>
    %48 = vector.multi_reduction <add>, %47, %cst_23 [1] : vector<4x32xf32> to vector<4xf32>
    %49 = arith.index_cast %c0_i32_17 : i32 to index
    %c0_24 = arith.constant 0 : index
    %50 = vector.load %arg12[%49, %c0_24] : memref<8x4xf32, #tpu.memory_space<vmem>>, vector<1x4xf32>
    %51 = vector.shape_cast %50 : vector<1x4xf32> to vector<4xf32>
    %52 = vector.shape_cast %48 : vector<4xf32> to vector<1x4xf32>
    tpu.vector_store %arg12[%49, %c0_24], %52 {strides = array<i32>} : memref<8x4xf32, #tpu.memory_space<vmem>>, vector<1x4xf32>,
    %c1_i32 = arith.constant 1 : i32
    %c4_i32_25 = arith.constant 4 : i32
    %53 = arith.muli %c1_i32, %c4_i32_25 : i32
    %54 = tpu.assume_multiple %53, 4 : i32
    %55 = arith.index_cast %54 : i32 to index
    %c0_26 = arith.constant 0 : index
    %56 = vector.load %arg11[%55, %c0_26] : memref<32x128xf32, #tpu.memory_space<vmem>>, vector<4x128xf32>
    %cst_27 = arith.constant dense<0.000000e+00> : vector<4x128xf32>
    %57 = tpu.matmul %45, %11, %cst_27 {dimension_numbers = #tpu.dot_dimension_numbers<[1], [0], [0], [1], [0, 0, 1, 1], [], []>} : vector<4x32xf32>, vector<32x128xf32>, vector<4x128xf32> -> vector<4x128xf32>
    %58 = arith.addf %56, %57 : vector<4x128xf32>
    %59 = vector.extract_strided_slice %58 {offsets = [0, 0], sizes = [4, 32], strides = [1, 1]} : vector<4x128xf32> to vector<4x32xf32>
    %60 = arith.negf %59 : vector<4x32xf32>
    %61 = math.exp %60 : vector<4x32xf32>
    %cst_28 = arith.constant 1.000000e+00 : f32
    %62 = vector.broadcast %cst_28 : f32 to vector<4x32xf32>
    %63 = arith.addf %62, %61 : vector<4x32xf32>
    %64 = arith.divf %62, %63 : vector<4x32xf32>
    %65 = vector.extract_strided_slice %58 {offsets = [0, 32], sizes = [4, 32], strides = [1, 1]} : vector<4x128xf32> to vector<4x32xf32>
    %66 = arith.negf %65 : vector<4x32xf32>
    %67 = math.exp %66 : vector<4x32xf32>
    %cst_29 = arith.constant 1.000000e+00 : f32
    %68 = vector.broadcast %cst_29 : f32 to vector<4x32xf32>
    %69 = arith.addf %68, %67 : vector<4x32xf32>
    %70 = arith.divf %68, %69 : vector<4x32xf32>
    %71 = vector.extract_strided_slice %58 {offsets = [0, 64], sizes = [4, 32], strides = [1, 1]} : vector<4x128xf32> to vector<4x32xf32>
    %72 = math.tanh %71 : vector<4x32xf32>
    %73 = vector.extract_strided_slice %58 {offsets = [0, 96], sizes = [4, 32], strides = [1, 1]} : vector<4x128xf32> to vector<4x32xf32>
    %74 = arith.negf %73 : vector<4x32xf32>
    %75 = math.exp %74 : vector<4x32xf32>
    %cst_30 = arith.constant 1.000000e+00 : f32
    %76 = vector.broadcast %cst_30 : f32 to vector<4x32xf32>
    %77 = arith.addf %76, %75 : vector<4x32xf32>
    %78 = arith.divf %76, %77 : vector<4x32xf32>
    %79 = arith.mulf %70, %43 : vector<4x32xf32>
    %80 = arith.mulf %64, %72 : vector<4x32xf32>
    %81 = arith.addf %79, %80 : vector<4x32xf32>
    %82 = math.tanh %81 : vector<4x32xf32>
    %83 = arith.mulf %78, %82 : vector<4x32xf32>
    %84 = vector.broadcast %12 : vector<1x32xf32> to vector<4x32xf32>
    %85 = arith.mulf %83, %84 : vector<4x32xf32>
    %cst_31 = arith.constant dense<0.000000e+00> : vector<4xf32>
    %86 = vector.multi_reduction <add>, %85, %cst_31 [1] : vector<4x32xf32> to vector<4xf32>
    %87 = arith.index_cast %c1_i32 : i32 to index
    %c0_32 = arith.constant 0 : index
    %88 = vector.load %arg12[%87, %c0_32] : memref<8x4xf32, #tpu.memory_space<vmem>>, vector<1x4xf32>
    %89 = vector.shape_cast %88 : vector<1x4xf32> to vector<4xf32>
    %90 = vector.shape_cast %86 : vector<4xf32> to vector<1x4xf32>
    tpu.vector_store %arg12[%87, %c0_32], %90 {strides = array<i32>} : memref<8x4xf32, #tpu.memory_space<vmem>>, vector<1x4xf32>,
    %c2_i32 = arith.constant 2 : i32
    %c4_i32_33 = arith.constant 4 : i32
    %91 = arith.muli %c2_i32, %c4_i32_33 : i32
    %92 = tpu.assume_multiple %91, 4 : i32
    %93 = arith.index_cast %92 : i32 to index
    %c0_34 = arith.constant 0 : index
    %94 = vector.load %arg11[%93, %c0_34] : memref<32x128xf32, #tpu.memory_space<vmem>>, vector<4x128xf32>
    %cst_35 = arith.constant dense<0.000000e+00> : vector<4x128xf32>
    %95 = tpu.matmul %83, %11, %cst_35 {dimension_numbers = #tpu.dot_dimension_numbers<[1], [0], [0], [1], [0, 0, 1, 1], [], []>} : vector<4x32xf32>, vector<32x128xf32>, vector<4x128xf32> -> vector<4x128xf32>
    %96 = arith.addf %94, %95 : vector<4x128xf32>
    %97 = vector.extract_strided_slice %96 {offsets = [0, 0], sizes = [4, 32], strides = [1, 1]} : vector<4x128xf32> to vector<4x32xf32>
    %98 = arith.negf %97 : vector<4x32xf32>
    %99 = math.exp %98 : vector<4x32xf32>
    %cst_36 = arith.constant 1.000000e+00 : f32
    %100 = vector.broadcast %cst_36 : f32 to vector<4x32xf32>
    %101 = arith.addf %100, %99 : vector<4x32xf32>
    %102 = arith.divf %100, %101 : vector<4x32xf32>
    %103 = vector.extract_strided_slice %96 {offsets = [0, 32], sizes = [4, 32], strides = [1, 1]} : vector<4x128xf32> to vector<4x32xf32>
    %104 = arith.negf %103 : vector<4x32xf32>
    %105 = math.exp %104 : vector<4x32xf32>
    %cst_37 = arith.constant 1.000000e+00 : f32
    %106 = vector.broadcast %cst_37 : f32 to vector<4x32xf32>
    %107 = arith.addf %106, %105 : vector<4x32xf32>
    %108 = arith.divf %106, %107 : vector<4x32xf32>
    %109 = vector.extract_strided_slice %96 {offsets = [0, 64], sizes = [4, 32], strides = [1, 1]} : vector<4x128xf32> to vector<4x32xf32>
    %110 = math.tanh %109 : vector<4x32xf32>
    %111 = vector.extract_strided_slice %96 {offsets = [0, 96], sizes = [4, 32], strides = [1, 1]} : vector<4x128xf32> to vector<4x32xf32>
    %112 = arith.negf %111 : vector<4x32xf32>
    %113 = math.exp %112 : vector<4x32xf32>
    %cst_38 = arith.constant 1.000000e+00 : f32
    %114 = vector.broadcast %cst_38 : f32 to vector<4x32xf32>
    %115 = arith.addf %114, %113 : vector<4x32xf32>
    %116 = arith.divf %114, %115 : vector<4x32xf32>
    %117 = arith.mulf %108, %81 : vector<4x32xf32>
    %118 = arith.mulf %102, %110 : vector<4x32xf32>
    %119 = arith.addf %117, %118 : vector<4x32xf32>
    %120 = math.tanh %119 : vector<4x32xf32>
    %121 = arith.mulf %116, %120 : vector<4x32xf32>
    %122 = vector.broadcast %12 : vector<1x32xf32> to vector<4x32xf32>
    %123 = arith.mulf %121, %122 : vector<4x32xf32>
    %cst_39 = arith.constant dense<0.000000e+00> : vector<4xf32>
    %124 = vector.multi_reduction <add>, %123, %cst_39 [1] : vector<4x32xf32> to vector<4xf32>
    %125 = arith.index_cast %c2_i32 : i32 to index
    %c0_40 = arith.constant 0 : index
    %126 = vector.load %arg12[%125, %c0_40] : memref<8x4xf32, #tpu.memory_space<vmem>>, vector<1x4xf32>
    %127 = vector.shape_cast %126 : vector<1x4xf32> to vector<4xf32>
    %128 = vector.shape_cast %124 : vector<4xf32> to vector<1x4xf32>
    tpu.vector_store %arg12[%125, %c0_40], %128 {strides = array<i32>} : memref<8x4xf32, #tpu.memory_space<vmem>>, vector<1x4xf32>,
    %c3_i32 = arith.constant 3 : i32
    %c4_i32_41 = arith.constant 4 : i32
    %129 = arith.muli %c3_i32, %c4_i32_41 : i32
    %130 = tpu.assume_multiple %129, 4 : i32
    %131 = arith.index_cast %130 : i32 to index
    %c0_42 = arith.constant 0 : index
    %132 = vector.load %arg11[%131, %c0_42] : memref<32x128xf32, #tpu.memory_space<vmem>>, vector<4x128xf32>
    %cst_43 = arith.constant dense<0.000000e+00> : vector<4x128xf32>
    %133 = tpu.matmul %121, %11, %cst_43 {dimension_numbers = #tpu.dot_dimension_numbers<[1], [0], [0], [1], [0, 0, 1, 1], [], []>} : vector<4x32xf32>, vector<32x128xf32>, vector<4x128xf32> -> vector<4x128xf32>
    %134 = arith.addf %132, %133 : vector<4x128xf32>
    %135 = vector.extract_strided_slice %134 {offsets = [0, 0], sizes = [4, 32], strides = [1, 1]} : vector<4x128xf32> to vector<4x32xf32>
    %136 = arith.negf %135 : vector<4x32xf32>
    %137 = math.exp %136 : vector<4x32xf32>
    %cst_44 = arith.constant 1.000000e+00 : f32
    %138 = vector.broadcast %cst_44 : f32 to vector<4x32xf32>
    %139 = arith.addf %138, %137 : vector<4x32xf32>
    %140 = arith.divf %138, %139 : vector<4x32xf32>
    %141 = vector.extract_strided_slice %134 {offsets = [0, 32], sizes = [4, 32], strides = [1, 1]} : vector<4x128xf32> to vector<4x32xf32>
    %142 = arith.negf %141 : vector<4x32xf32>
    %143 = math.exp %142 : vector<4x32xf32>
    %cst_45 = arith.constant 1.000000e+00 : f32
    %144 = vector.broadcast %cst_45 : f32 to vector<4x32xf32>
    %145 = arith.addf %144, %143 : vector<4x32xf32>
    %146 = arith.divf %144, %145 : vector<4x32xf32>
    %147 = vector.extract_strided_slice %134 {offsets = [0, 64], sizes = [4, 32], strides = [1, 1]} : vector<4x128xf32> to vector<4x32xf32>
    %148 = math.tanh %147 : vector<4x32xf32>
    %149 = vector.extract_strided_slice %134 {offsets = [0, 96], sizes = [4, 32], strides = [1, 1]} : vector<4x128xf32> to vector<4x32xf32>
    %150 = arith.negf %149 : vector<4x32xf32>
    %151 = math.exp %150 : vector<4x32xf32>
    %cst_46 = arith.constant 1.000000e+00 : f32
    %152 = vector.broadcast %cst_46 : f32 to vector<4x32xf32>
    %153 = arith.addf %152, %151 : vector<4x32xf32>
    %154 = arith.divf %152, %153 : vector<4x32xf32>
    %155 = arith.mulf %146, %119 : vector<4x32xf32>
    %156 = arith.mulf %140, %148 : vector<4x32xf32>
    %157 = arith.addf %155, %156 : vector<4x32xf32>
    %158 = math.tanh %157 : vector<4x32xf32>
    %159 = arith.mulf %154, %158 : vector<4x32xf32>
    %160 = vector.broadcast %12 : vector<1x32xf32> to vector<4x32xf32>
    %161 = arith.mulf %159, %160 : vector<4x32xf32>
    %cst_47 = arith.constant dense<0.000000e+00> : vector<4xf32>
    %162 = vector.multi_reduction <add>, %161, %cst_47 [1] : vector<4x32xf32> to vector<4xf32>
    %163 = arith.index_cast %c3_i32 : i32 to index
    %c0_48 = arith.constant 0 : index
    %164 = vector.load %arg12[%163, %c0_48] : memref<8x4xf32, #tpu.memory_space<vmem>>, vector<1x4xf32>
    %165 = vector.shape_cast %164 : vector<1x4xf32> to vector<4xf32>
    %166 = vector.shape_cast %162 : vector<4xf32> to vector<1x4xf32>
    tpu.vector_store %arg12[%163, %c0_48], %166 {strides = array<i32>} : memref<8x4xf32, #tpu.memory_space<vmem>>, vector<1x4xf32>,
    %c4_i32_49 = arith.constant 4 : i32
    %c4_i32_50 = arith.constant 4 : i32
    %167 = arith.muli %c4_i32_49, %c4_i32_50 : i32
    %168 = tpu.assume_multiple %167, 4 : i32
    %169 = arith.index_cast %168 : i32 to index
    %c0_51 = arith.constant 0 : index
    %170 = vector.load %arg11[%169, %c0_51] : memref<32x128xf32, #tpu.memory_space<vmem>>, vector<4x128xf32>
    %cst_52 = arith.constant dense<0.000000e+00> : vector<4x128xf32>
    %171 = tpu.matmul %159, %11, %cst_52 {dimension_numbers = #tpu.dot_dimension_numbers<[1], [0], [0], [1], [0, 0, 1, 1], [], []>} : vector<4x32xf32>, vector<32x128xf32>, vector<4x128xf32> -> vector<4x128xf32>
    %172 = arith.addf %170, %171 : vector<4x128xf32>
    %173 = vector.extract_strided_slice %172 {offsets = [0, 0], sizes = [4, 32], strides = [1, 1]} : vector<4x128xf32> to vector<4x32xf32>
    %174 = arith.negf %173 : vector<4x32xf32>
    %175 = math.exp %174 : vector<4x32xf32>
    %cst_53 = arith.constant 1.000000e+00 : f32
    %176 = vector.broadcast %cst_53 : f32 to vector<4x32xf32>
    %177 = arith.addf %176, %175 : vector<4x32xf32>
    %178 = arith.divf %176, %177 : vector<4x32xf32>
    %179 = vector.extract_strided_slice %172 {offsets = [0, 32], sizes = [4, 32], strides = [1, 1]} : vector<4x128xf32> to vector<4x32xf32>
    %180 = arith.negf %179 : vector<4x32xf32>
    %181 = math.exp %180 : vector<4x32xf32>
    %cst_54 = arith.constant 1.000000e+00 : f32
    %182 = vector.broadcast %cst_54 : f32 to vector<4x32xf32>
    %183 = arith.addf %182, %181 : vector<4x32xf32>
    %184 = arith.divf %182, %183 : vector<4x32xf32>
    %185 = vector.extract_strided_slice %172 {offsets = [0, 64], sizes = [4, 32], strides = [1, 1]} : vector<4x128xf32> to vector<4x32xf32>
    %186 = math.tanh %185 : vector<4x32xf32>
    %187 = vector.extract_strided_slice %172 {offsets = [0, 96], sizes = [4, 32], strides = [1, 1]} : vector<4x128xf32> to vector<4x32xf32>
    %188 = arith.negf %187 : vector<4x32xf32>
    %189 = math.exp %188 : vector<4x32xf32>
    %cst_55 = arith.constant 1.000000e+00 : f32
    %190 = vector.broadcast %cst_55 : f32 to vector<4x32xf32>
    %191 = arith.addf %190, %189 : vector<4x32xf32>
    %192 = arith.divf %190, %191 : vector<4x32xf32>
    %193 = arith.mulf %184, %157 : vector<4x32xf32>
    %194 = arith.mulf %178, %186 : vector<4x32xf32>
    %195 = arith.addf %193, %194 : vector<4x32xf32>
    %196 = math.tanh %195 : vector<4x32xf32>
    %197 = arith.mulf %192, %196 : vector<4x32xf32>
    %198 = vector.broadcast %12 : vector<1x32xf32> to vector<4x32xf32>
    %199 = arith.mulf %197, %198 : vector<4x32xf32>
    %cst_56 = arith.constant dense<0.000000e+00> : vector<4xf32>
    %200 = vector.multi_reduction <add>, %199, %cst_56 [1] : vector<4x32xf32> to vector<4xf32>
    %201 = arith.index_cast %c4_i32_49 : i32 to index
    %c0_57 = arith.constant 0 : index
    %202 = vector.load %arg12[%201, %c0_57] : memref<8x4xf32, #tpu.memory_space<vmem>>, vector<1x4xf32>
    %203 = vector.shape_cast %202 : vector<1x4xf32> to vector<4xf32>
    %204 = vector.shape_cast %200 : vector<4xf32> to vector<1x4xf32>
    tpu.vector_store %arg12[%201, %c0_57], %204 {strides = array<i32>} : memref<8x4xf32, #tpu.memory_space<vmem>>, vector<1x4xf32>,
    %c5_i32 = arith.constant 5 : i32
    %c4_i32_58 = arith.constant 4 : i32
    %205 = arith.muli %c5_i32, %c4_i32_58 : i32
    %206 = tpu.assume_multiple %205, 4 : i32
    %207 = arith.index_cast %206 : i32 to index
    %c0_59 = arith.constant 0 : index
    %208 = vector.load %arg11[%207, %c0_59] : memref<32x128xf32, #tpu.memory_space<vmem>>, vector<4x128xf32>
    %cst_60 = arith.constant dense<0.000000e+00> : vector<4x128xf32>
    %209 = tpu.matmul %197, %11, %cst_60 {dimension_numbers = #tpu.dot_dimension_numbers<[1], [0], [0], [1], [0, 0, 1, 1], [], []>} : vector<4x32xf32>, vector<32x128xf32>, vector<4x128xf32> -> vector<4x128xf32>
    %210 = arith.addf %208, %209 : vector<4x128xf32>
    %211 = vector.extract_strided_slice %210 {offsets = [0, 0], sizes = [4, 32], strides = [1, 1]} : vector<4x128xf32> to vector<4x32xf32>
    %212 = arith.negf %211 : vector<4x32xf32>
    %213 = math.exp %212 : vector<4x32xf32>
    %cst_61 = arith.constant 1.000000e+00 : f32
    %214 = vector.broadcast %cst_61 : f32 to vector<4x32xf32>
    %215 = arith.addf %214, %213 : vector<4x32xf32>
    %216 = arith.divf %214, %215 : vector<4x32xf32>
    %217 = vector.extract_strided_slice %210 {offsets = [0, 32], sizes = [4, 32], strides = [1, 1]} : vector<4x128xf32> to vector<4x32xf32>
    %218 = arith.negf %217 : vector<4x32xf32>
    %219 = math.exp %218 : vector<4x32xf32>
    %cst_62 = arith.constant 1.000000e+00 : f32
    %220 = vector.broadcast %cst_62 : f32 to vector<4x32xf32>
    %221 = arith.addf %220, %219 : vector<4x32xf32>
    %222 = arith.divf %220, %221 : vector<4x32xf32>
    %223 = vector.extract_strided_slice %210 {offsets = [0, 64], sizes = [4, 32], strides = [1, 1]} : vector<4x128xf32> to vector<4x32xf32>
    %224 = math.tanh %223 : vector<4x32xf32>
    %225 = vector.extract_strided_slice %210 {offsets = [0, 96], sizes = [4, 32], strides = [1, 1]} : vector<4x128xf32> to vector<4x32xf32>
    %226 = arith.negf %225 : vector<4x32xf32>
    %227 = math.exp %226 : vector<4x32xf32>
    %cst_63 = arith.constant 1.000000e+00 : f32
    %228 = vector.broadcast %cst_63 : f32 to vector<4x32xf32>
    %229 = arith.addf %228, %227 : vector<4x32xf32>
    %230 = arith.divf %228, %229 : vector<4x32xf32>
    %231 = arith.mulf %222, %195 : vector<4x32xf32>
    %232 = arith.mulf %216, %224 : vector<4x32xf32>
    %233 = arith.addf %231, %232 : vector<4x32xf32>
    %234 = math.tanh %233 : vector<4x32xf32>
    %235 = arith.mulf %230, %234 : vector<4x32xf32>
    %236 = vector.broadcast %12 : vector<1x32xf32> to vector<4x32xf32>
    %237 = arith.mulf %235, %236 : vector<4x32xf32>
    %cst_64 = arith.constant dense<0.000000e+00> : vector<4xf32>
    %238 = vector.multi_reduction <add>, %237, %cst_64 [1] : vector<4x32xf32> to vector<4xf32>
    %239 = arith.index_cast %c5_i32 : i32 to index
    %c0_65 = arith.constant 0 : index
    %240 = vector.load %arg12[%239, %c0_65] : memref<8x4xf32, #tpu.memory_space<vmem>>, vector<1x4xf32>
    %241 = vector.shape_cast %240 : vector<1x4xf32> to vector<4xf32>
    %242 = vector.shape_cast %238 : vector<4xf32> to vector<1x4xf32>
    tpu.vector_store %arg12[%239, %c0_65], %242 {strides = array<i32>} : memref<8x4xf32, #tpu.memory_space<vmem>>, vector<1x4xf32>,
    %c6_i32 = arith.constant 6 : i32
    %c4_i32_66 = arith.constant 4 : i32
    %243 = arith.muli %c6_i32, %c4_i32_66 : i32
    %244 = tpu.assume_multiple %243, 4 : i32
    %245 = arith.index_cast %244 : i32 to index
    %c0_67 = arith.constant 0 : index
    %246 = vector.load %arg11[%245, %c0_67] : memref<32x128xf32, #tpu.memory_space<vmem>>, vector<4x128xf32>
    %cst_68 = arith.constant dense<0.000000e+00> : vector<4x128xf32>
    %247 = tpu.matmul %235, %11, %cst_68 {dimension_numbers = #tpu.dot_dimension_numbers<[1], [0], [0], [1], [0, 0, 1, 1], [], []>} : vector<4x32xf32>, vector<32x128xf32>, vector<4x128xf32> -> vector<4x128xf32>
    %248 = arith.addf %246, %247 : vector<4x128xf32>
    %249 = vector.extract_strided_slice %248 {offsets = [0, 0], sizes = [4, 32], strides = [1, 1]} : vector<4x128xf32> to vector<4x32xf32>
    %250 = arith.negf %249 : vector<4x32xf32>
    %251 = math.exp %250 : vector<4x32xf32>
    %cst_69 = arith.constant 1.000000e+00 : f32
    %252 = vector.broadcast %cst_69 : f32 to vector<4x32xf32>
    %253 = arith.addf %252, %251 : vector<4x32xf32>
    %254 = arith.divf %252, %253 : vector<4x32xf32>
    %255 = vector.extract_strided_slice %248 {offsets = [0, 32], sizes = [4, 32], strides = [1, 1]} : vector<4x128xf32> to vector<4x32xf32>
    %256 = arith.negf %255 : vector<4x32xf32>
    %257 = math.exp %256 : vector<4x32xf32>
    %cst_70 = arith.constant 1.000000e+00 : f32
    %258 = vector.broadcast %cst_70 : f32 to vector<4x32xf32>
    %259 = arith.addf %258, %257 : vector<4x32xf32>
    %260 = arith.divf %258, %259 : vector<4x32xf32>
    %261 = vector.extract_strided_slice %248 {offsets = [0, 64], sizes = [4, 32], strides = [1, 1]} : vector<4x128xf32> to vector<4x32xf32>
    %262 = math.tanh %261 : vector<4x32xf32>
    %263 = vector.extract_strided_slice %248 {offsets = [0, 96], sizes = [4, 32], strides = [1, 1]} : vector<4x128xf32> to vector<4x32xf32>
    %264 = arith.negf %263 : vector<4x32xf32>
    %265 = math.exp %264 : vector<4x32xf32>
    %cst_71 = arith.constant 1.000000e+00 : f32
    %266 = vector.broadcast %cst_71 : f32 to vector<4x32xf32>
    %267 = arith.addf %266, %265 : vector<4x32xf32>
    %268 = arith.divf %266, %267 : vector<4x32xf32>
    %269 = arith.mulf %260, %233 : vector<4x32xf32>
    %270 = arith.mulf %254, %262 : vector<4x32xf32>
    %271 = arith.addf %269, %270 : vector<4x32xf32>
    %272 = math.tanh %271 : vector<4x32xf32>
    %273 = arith.mulf %268, %272 : vector<4x32xf32>
    %274 = vector.broadcast %12 : vector<1x32xf32> to vector<4x32xf32>
    %275 = arith.mulf %273, %274 : vector<4x32xf32>
    %cst_72 = arith.constant dense<0.000000e+00> : vector<4xf32>
    %276 = vector.multi_reduction <add>, %275, %cst_72 [1] : vector<4x32xf32> to vector<4xf32>
    %277 = arith.index_cast %c6_i32 : i32 to index
    %c0_73 = arith.constant 0 : index
    %278 = vector.load %arg12[%277, %c0_73] : memref<8x4xf32, #tpu.memory_space<vmem>>, vector<1x4xf32>
    %279 = vector.shape_cast %278 : vector<1x4xf32> to vector<4xf32>
    %280 = vector.shape_cast %276 : vector<4xf32> to vector<1x4xf32>
    tpu.vector_store %arg12[%277, %c0_73], %280 {strides = array<i32>} : memref<8x4xf32, #tpu.memory_space<vmem>>, vector<1x4xf32>,
    %c7_i32 = arith.constant 7 : i32
    %c4_i32_74 = arith.constant 4 : i32
    %281 = arith.muli %c7_i32, %c4_i32_74 : i32
    %282 = tpu.assume_multiple %281, 4 : i32
    %283 = arith.index_cast %282 : i32 to index
    %c0_75 = arith.constant 0 : index
    %284 = vector.load %arg11[%283, %c0_75] : memref<32x128xf32, #tpu.memory_space<vmem>>, vector<4x128xf32>
    %cst_76 = arith.constant dense<0.000000e+00> : vector<4x128xf32>
    %285 = tpu.matmul %273, %11, %cst_76 {dimension_numbers = #tpu.dot_dimension_numbers<[1], [0], [0], [1], [0, 0, 1, 1], [], []>} : vector<4x32xf32>, vector<32x128xf32>, vector<4x128xf32> -> vector<4x128xf32>
    %286 = arith.addf %284, %285 : vector<4x128xf32>
    %287 = vector.extract_strided_slice %286 {offsets = [0, 0], sizes = [4, 32], strides = [1, 1]} : vector<4x128xf32> to vector<4x32xf32>
    %288 = arith.negf %287 : vector<4x32xf32>
    %289 = math.exp %288 : vector<4x32xf32>
    %cst_77 = arith.constant 1.000000e+00 : f32
    %290 = vector.broadcast %cst_77 : f32 to vector<4x32xf32>
    %291 = arith.addf %290, %289 : vector<4x32xf32>
    %292 = arith.divf %290, %291 : vector<4x32xf32>
    %293 = vector.extract_strided_slice %286 {offsets = [0, 32], sizes = [4, 32], strides = [1, 1]} : vector<4x128xf32> to vector<4x32xf32>
    %294 = arith.negf %293 : vector<4x32xf32>
    %295 = math.exp %294 : vector<4x32xf32>
    %cst_78 = arith.constant 1.000000e+00 : f32
    %296 = vector.broadcast %cst_78 : f32 to vector<4x32xf32>
    %297 = arith.addf %296, %295 : vector<4x32xf32>
    %298 = arith.divf %296, %297 : vector<4x32xf32>
    %299 = vector.extract_strided_slice %286 {offsets = [0, 64], sizes = [4, 32], strides = [1, 1]} : vector<4x128xf32> to vector<4x32xf32>
    %300 = math.tanh %299 : vector<4x32xf32>
    %301 = vector.extract_strided_slice %286 {offsets = [0, 96], sizes = [4, 32], strides = [1, 1]} : vector<4x128xf32> to vector<4x32xf32>
    %302 = arith.negf %301 : vector<4x32xf32>
    %303 = math.exp %302 : vector<4x32xf32>
    %cst_79 = arith.constant 1.000000e+00 : f32
    %304 = vector.broadcast %cst_79 : f32 to vector<4x32xf32>
    %305 = arith.addf %304, %303 : vector<4x32xf32>
    %306 = arith.divf %304, %305 : vector<4x32xf32>
    %307 = arith.mulf %298, %271 : vector<4x32xf32>
    %308 = arith.mulf %292, %300 : vector<4x32xf32>
    %309 = arith.addf %307, %308 : vector<4x32xf32>
    %310 = math.tanh %309 : vector<4x32xf32>
    %311 = arith.mulf %306, %310 : vector<4x32xf32>
    %312 = vector.broadcast %12 : vector<1x32xf32> to vector<4x32xf32>
    %313 = arith.mulf %311, %312 : vector<4x32xf32>
    %cst_80 = arith.constant dense<0.000000e+00> : vector<4xf32>
    %314 = vector.multi_reduction <add>, %313, %cst_80 [1] : vector<4x32xf32> to vector<4xf32>
    %315 = arith.index_cast %c7_i32 : i32 to index
    %c0_81 = arith.constant 0 : index
    %316 = vector.load %arg12[%315, %c0_81] : memref<8x4xf32, #tpu.memory_space<vmem>>, vector<1x4xf32>
    %317 = vector.shape_cast %316 : vector<1x4xf32> to vector<4xf32>
    %318 = vector.shape_cast %314 : vector<4xf32> to vector<1x4xf32>
    tpu.vector_store %arg12[%315, %c0_81], %318 {strides = array<i32>} : memref<8x4xf32, #tpu.memory_space<vmem>>, vector<1x4xf32>,
    %c8_i32 = arith.constant 8 : i32
    %c0_82 = arith.constant 0 : index
    %c0_83 = arith.constant 0 : index
    %319 = vector.load %arg9[%c0_82, %c0_83] : memref<4x32xf32, #tpu.memory_space<vmem>>, vector<4x32xf32>
    tpu.vector_store %arg9[%c0_82, %c0_83], %311 {strides = array<i32>} : memref<4x32xf32, #tpu.memory_space<vmem>>, vector<4x32xf32>,
    %c0_84 = arith.constant 0 : index
    %c0_85 = arith.constant 0 : index
    %320 = vector.load %arg10[%c0_84, %c0_85] : memref<4x32xf32, #tpu.memory_space<vmem>>, vector<4x32xf32>
    tpu.vector_store %arg10[%c0_84, %c0_85], %309 {strides = array<i32>} : memref<4x32xf32, #tpu.memory_space<vmem>>, vector<4x32xf32>,
    %c0_86 = arith.constant 0 : index
    %c0_87 = arith.constant 0 : index
    %321 = vector.load %arg12[%c0_86, %c0_87] : memref<8x4xf32, #tpu.memory_space<vmem>>, vector<8x4xf32>
    %c0_88 = arith.constant 0 : index
    %c0_89 = arith.constant 0 : index
    %322 = memref.load %arg7[%c0_88, %c0_89] : memref<1x1xf32, #tpu.memory_space<smem>>
    %323 = vector.broadcast %322 : f32 to vector<8x4xf32>
    %324 = arith.addf %321, %323 : vector<8x4xf32>
    %325 = arith.negf %324 : vector<8x4xf32>
    %326 = math.exp %325 : vector<8x4xf32>
    %cst_90 = arith.constant 1.000000e+00 : f32
    %327 = vector.broadcast %cst_90 : f32 to vector<8x4xf32>
    %328 = arith.addf %327, %326 : vector<8x4xf32>
    %329 = arith.divf %327, %328 : vector<8x4xf32>
    %c0_91 = arith.constant 0 : index
    %c0_92 = arith.constant 0 : index
    %c0_93 = arith.constant 0 : index
    %330 = vector.load %arg8[%c0_91, %c0_92, %c0_93] : memref<1x8x4xf32, #tpu.memory_space<vmem>>, vector<1x8x4xf32>
    %331 = vector.shape_cast %330 : vector<1x8x4xf32> to vector<8x4xf32>
    %332 = vector.shape_cast %329 : vector<8x4xf32> to vector<1x8x4xf32>
    tpu.vector_store %arg8[%c0_91, %c0_92, %c0_93], %332 {strides = array<i32>} : memref<1x8x4xf32, #tpu.memory_space<vmem>>, vector<1x8x4xf32>,
    return
  }
  func.func @transform_0(%arg0: i32, %arg1: i32) -> (i32, i32, i32) {
    %c0_i32 = arith.constant 0 : i32
    %c0_i32_0 = arith.constant 0 : i32
    return %arg0, %arg1, %c0_i32 : i32, i32, i32
  }
  func.func @transform_1(%arg0: i32, %arg1: i32) -> (i32, i32) {
    %c0_i32 = arith.constant 0 : i32
    %c0_i32_0 = arith.constant 0 : i32
    %c0_i32_1 = arith.constant 0 : i32
    return %c0_i32, %c0_i32_0 : i32, i32
  }
  func.func @transform_2(%arg0: i32, %arg1: i32) -> (i32, i32) {
    %c0_i32 = arith.constant 0 : i32
    %c0_i32_0 = arith.constant 0 : i32
    %c0_i32_1 = arith.constant 0 : i32
    return %c0_i32, %c0_i32_0 : i32, i32
  }
  func.func @transform_3(%arg0: i32, %arg1: i32) -> (i32, i32) {
    %c0_i32 = arith.constant 0 : i32
    %c0_i32_0 = arith.constant 0 : i32
    %c0_i32_1 = arith.constant 0 : i32
    return %c0_i32, %c0_i32_0 : i32, i32
  }
  func.func @transform_4(%arg0: i32, %arg1: i32) -> (i32, i32) {
    %c0_i32 = arith.constant 0 : i32
    %c0_i32_0 = arith.constant 0 : i32
    %c0_i32_1 = arith.constant 0 : i32
    return %c0_i32, %c0_i32_0 : i32, i32
  }
  func.func @transform_5(%arg0: i32, %arg1: i32) -> (i32, i32) {
    %c0_i32 = arith.constant 0 : i32
    %c0_i32_0 = arith.constant 0 : i32
    %c0_i32_1 = arith.constant 0 : i32
    return %c0_i32, %c0_i32_0 : i32, i32
  }
  func.func @transform_6(%arg0: i32, %arg1: i32) -> (i32, i32, i32) {
    %c0_i32 = arith.constant 0 : i32
    %c0_i32_0 = arith.constant 0 : i32
    return %arg0, %arg1, %c0_i32 : i32, i32, i32
  }
}

</mosaic_0001>

<bundles_post_ra>
// kernel: tpu_custom_call.1
= control target key start
LH: loop header
LB: loop body
LE: loop exit
PB: predicated region body
PF: predicated region fallthrough
CT: control target
= control target key end

     0   :  { %vm43_vm0 = vcmask 64512   ;;  %v1414_v3 = vmov 0.0|0.0   ;;  %vm1415_vm1 = vmmov 0   ;;  %v1416_v4 = vmov 0.0   ;;  %s1417_s11 = smov 64   ;;  %s1418_s12 = smov 32   ;;  %s1647_s1 = inlined_call_operand.vmem [shape: f32[8,128], index: 1, kind: input, shape index: {}]   ;;  %s1648_s0 = inlined_call_operand.vmem [shape: f32[1,32,8], index: 0, kind: input, shape index: {}]   ;;  %s1649_s2 = inlined_call_operand.vmem [shape: f32[32,128], index: 2, kind: input, shape index: {}]   ;;  %s1650_s3 = inlined_call_operand.vmem [shape: f32[1,128], index: 3, kind: input, shape index: {}]   ;;  %s1651_s4 = inlined_call_operand.vmem [shape: f32[1,32], index: 4, kind: input, shape index: {}]   ;;  %s1652_s5 = inlined_call_operand.<no memory space> [shape: f32[1,1], index: 5, kind: input, shape index: {}]   ;;  %s1653_s6 = inlined_call_operand.vmem [shape: f32[1,8,4], index: 6, kind: output, shape index: {}]  }
   0x1   :  { %v35_v0 = vld [vmem:[%s1647_s1] sm:$0xff]  ;;  %v32_v2 = vld [vmem:[%s1648_s0 + $0x8] sm:$0xff]  ;;  %1292 = vmatprep.subr.bf16.mxu1 %v1414_v3  ;;  %1212 = vmatprep.mubr.msk.f32.mxu1 %vm1415_vm1, %v1416_v4  ;;  %vm28_vm2 = vcmask 257024   ;;  %v147_v7 = vld [vmem:[%s1649_s2 + $0x10] sm:$0xff]  ;;  %vm153_vm3 = vcmask 261120   ;;  %s1419_s17 = smov 96  }
   0x2   :  { %v31_v1 = vld [vmem:[%s1648_s0] sm:$0xff]  ;;  %1196 = vmatprep.subr.mxu0 %v35_v0  ;;  %v146_v6 = vld [vmem:[%s1649_s2 + $0x8] sm:$0xff]  ;;  %29 = vst.msk [vmem:[#allocation2] sm:$0xf] %vm28_vm2, %v1416_v4  ;;  %30 = vst.msk [vmem:[#allocation3] sm:$0xf] %vm28_vm2, %v1416_v4 }
   0x3   :  { %1198 = vmatprep.mubr.msk.f32.mxu0 %vm43_vm0, %v31_v1  ;;  %v145_v5 = vld [vmem:[%s1649_s2] sm:$0xff]  ;;  %1197 = vmatpush3.msra.mxu0 %v35_v0  ;;  %v148_v9 = vld [vmem:[%s1649_s2 + $0x18] sm:$0xff]  ;;  %v33_v33 = vld [vmem:[%s1648_s0 + $0x10] sm:$0xff]  ;;  %vm281_vm4 = vcmask 24576   ;;  %vm1122_vm5 = vcmask 31744  }
   0x4   :  { %v1481_v8 = vpack.c.bf16 %v146_v6, %v145_v5  ;;  %1199 = vmatmul.mubr.msk.f32.vlgmr.msra.gmra.mrb[0].mxu0 %vm43_vm0, %v32_v2  ;;  %1298 = vmatprep.subr.bf16.mxu0 %v1414_v3  ;;  %v1489_v10 = vpack.c.bf16 %v148_v9, %v147_v7  ;;  %v1128_v12 = vld [vmem:[%s1650_s3] ss:$0 sm:$0xff]  ;;  %v34_v34 = vld [vmem:[%s1648_s0 + $0x18] sm:$0xff] }
   0x5   :  { %1201 = vmatprep.mubr.msk.f32.mxu0 %vm43_vm0, %v33_v33 }
   0x6   :  { %1294 = vmatpush3.bf16.msra.mxu1 %v1481_v8  ;;  %1300 = vmatpush3.bf16.msra.mxu0 %v1481_v8 }
   0x7   :  { %1295 = vmatprep.subr.bf16.mxu1 %v1414_v3  ;;  %1301 = vmatprep.subr.bf16.mxu0 %v1414_v3 }
   0x8   :  { %1202 = vmatmul.mubr.msk.f32.gmra.mrb[2].mxu0 %vm43_vm0, %v34_v34 }
   0x9   :  { %v150_v11 = vld [vmem:[#allocation2] sm:$0xf]  ;;  %v151_v22 = vld [vmem:[#allocation3] sm:$0xf]  ;;  %1223 = vmatprep.mubr.msk.f32.mxu0 %vm1415_vm1, %v1416_v4 }
   0xa   :  { %1297 = vmatpush3.bf16.msra.mxu1 %v1489_v10  ;;  %1303 = vmatpush3.bf16.msra.mxu0 %v1489_v10 }
   0xb   :  { %1304 = vmatprep.subr.bf16.mxu1 %v1414_v3  ;;  %1310 = vmatprep.subr.bf16.mxu0 %v1414_v3 }
   0xd   :  { %1213 = vmatmul.mubr.msk.f32.vlgmr.msra.gmra.mrb[0].mxu1 %vm153_vm3, %v150_v11 }
   0xe   :  { %1306 = vmatpush3.bf16.msra.mxu1 %v1481_v8  ;;  %1234 = vmatprep.mubr.msk.f32.mxu1 %vm1415_vm1, %v1416_v4 }
   0xf   :  { %1307 = vmatprep.subr.bf16.mxu1 %v1414_v3 }
  0x12   :  { %1309 = vmatpush3.bf16.msra.mxu1 %v1489_v10 }
  0x13   :  { %1316 = vmatprep.subr.bf16.mxu1 %v1414_v3 }
  0xd7   :  { %v1200_v13 = vpop.f32.mrb[0].mxu0 }
  0xd8   :  { %v128_v14 = vadd.f32 %v1200_v13, %v1128_v12  ;;  %v122_v15 = vpop.f32.mrb[1].mxu0 }
  0xd9   :  { %v123_v16 = vadd.f32 %v1128_v12, %v122_v15 }
  0xda   :  { %142 = vst [vmem:[#allocation4 + $0x8] sm:$0xff] %v128_v14 }
  0xdb   :  { %141 = vst [vmem:[#allocation4] sm:$0xff] %v123_v16  ;;  %v1203_v38 = vpop.f32.mrb[2].mxu0 }
  0xdc   :  { %v138_v39 = vadd.f32 %v1203_v38, %v1128_v12  ;;  %v132_v40 = vpop.f32.mrb[3].mxu0 }
  0xdd   :  { %v133_v41 = vadd.f32 %v1128_v12, %v132_v40 }
  0xde   :  { %144 = vst [vmem:[#allocation4 + $0x18] sm:$0xff] %v138_v39 }
  0xdf   :  { %143 = vst [vmem:[#allocation4 + $0x10] sm:$0xff] %v133_v41 }
  0xe0   :  { %v223_v17 = vpop.f32.mrb[0].mxu1 }
  0xe1   :  { %v1214_v18 = vpop.f32.mrb[1].mxu1  ;;  %v401_v61 = vld [vmem:[#allocation4 + $0x8] sm:$0xf] }
  0xe2   :  { %v152_v19 = vld [vmem:[#allocation4] sm:$0xf]  ;;  %v284_v43 = vld [vmem:[#allocation4 + $0x4] sm:$0xf] }
  0xe3   :  { %v227_v20 = vadd.f32 %v223_v17, %v152_v19  ;;  %v518_v19 = vld [vmem:[#allocation4 + $0xc] sm:$0xf] }
  0xe5   :  { %1346 = vtanh.f32 %v227_v20  ;;  %v1134_v23 = vmul.f32 -1.442695, %v227_v20 }
  0xe6   :  { %v635_v38 = vld [vmem:[#allocation4 + $0x10] sm:$0xf] }
  0xe7   :  { %1348 = vpow2.f32 %v1134_v23 }
  0xef   :  { %v1347_v21 = vpop.eup %1346 }
  0xf0   :  { %241 = vrot.lane.b32.xlu0 %v1347_v21, %s1417_s11 }
  0xf1   :  { %v1349_v24 = vpop.eup %1348 }
  0xf2   :  { %v231_v25 = vadd.f32 1.0, %v1349_v24 }
  0xf4   :  { %236 = vrot.lane.b32.xlu0 %v151_v22, %s1418_s12  ;;  %1350 = vrcp.f32 %v231_v25 }
  0xfe   :  { %v1351_v26 = vpop.eup %1350 }
 0x162   :  { %v242_v27 = vpop.permute.xlu0 %241 }
 0x163   :  { %v244_v28 = vmul.f32 %v1351_v26, %v242_v27 }
 0x165   :  { %246 = vrot.lane.b32.xlu1 %v244_v28, %s1418_s12 }
 0x166   :  { %v237_v29 = vpop.permute.xlu0 %236 }
 0x167   :  { %v239_v30 = vmul.f32 %v1351_v26, %v237_v29 }
 0x1d7   :  { %v247_v31 = vpop.permute.xlu1 %246 }
 0x1d8   :  { %v249_v32 = vadd.f32 %v247_v31, %v239_v30 }
 0x1da   :  { %1352 = vtanh.f32 %v249_v32 }
 0x1e4   :  { %v1353_v35 = vpop.eup %1352 }
 0x1e5   :  { %252 = vrot.lane.b32.xlu1 %v1353_v35, %s1417_s11 }
 0x257   :  { %v253_v36 = vpop.permute.xlu1 %252 }
 0x258   :  { %v1522_v37 = vmul.f32 %v1351_v26, %v253_v36 }
 0x25a   :  { %286 = vrot.lane.b32.xlu0 %v1522_v37, %s1418_s12 }
 0x2cc   :  { %v287_v42 = vpop.permute.xlu0 %286 }
 0x2cd   :  { %1224 = vmatmul.mubr.msk.f32.vlgmr.msra.gmra.mrb[4].mxu0 %vm153_vm3, %v287_v42 }
 0x2ce   :  { %1312 = vmatpush3.bf16.msra.mxu0 %v1481_v8  ;;  %1245 = vmatprep.mubr.msk.f32.mxu0 %vm1415_vm1, %v1416_v4 }
 0x2cf   :  { %1313 = vmatprep.subr.bf16.mxu0 %v1414_v3 }
 0x2d2   :  { %1315 = vmatpush3.bf16.msra.mxu0 %v1489_v10 }
 0x2d3   :  { %1322 = vmatprep.subr.bf16.mxu0 %v1414_v3 }
 0x3a0   :  { %v356_v44 = vpop.f32.mrb[4].mxu0 }
 0x3a1   :  { %v360_v45 = vadd.f32 %v356_v44, %v284_v43  ;;  %v1225_v46 = vpop.f32.mrb[5].mxu0 }
 0x3a3   :  { %1354 = vtanh.f32 %v360_v45  ;;  %v1137_v48 = vmul.f32 -1.442695, %v360_v45 }
 0x3a5   :  { %1356 = vpow2.f32 %v1137_v48 }
 0x3ad   :  { %v1355_v47 = vpop.eup %1354 }
 0x3ae   :  { %370 = vrot.lane.b32.xlu1 %v1355_v47, %s1417_s11 }
 0x3af   :  { %v1357_v49 = vpop.eup %1356 }
 0x3b0   :  { %v364_v50 = vadd.f32 1.0, %v1357_v49 }
 0x3b2   :  { %1358 = vrcp.f32 %v364_v50 }
 0x3bc   :  { %v1359_v51 = vpop.eup %1358 }
 0x3bd   :  { %v368_v54 = vmul.f32 %v1359_v51, %v249_v32 }
 0x420   :  { %v371_v52 = vpop.permute.xlu1 %370 }
 0x421   :  { %v373_v53 = vmul.f32 %v1359_v51, %v371_v52 }
 0x423   :  { %375 = vrot.lane.b32.xlu0 %v373_v53, %s1418_s12 }
 0x495   :  { %v376_v55 = vpop.permute.xlu0 %375 }
 0x496   :  { %v378_v56 = vadd.f32 %v376_v55, %v368_v54 }
 0x498   :  { %1360 = vtanh.f32 %v378_v56 }
 0x4a2   :  { %v1361_v57 = vpop.eup %1360 }
 0x4a3   :  { %381 = vrot.lane.b32.xlu1 %v1361_v57, %s1417_s11 }
 0x515   :  { %v382_v58 = vpop.permute.xlu1 %381 }
 0x516   :  { %v1536_v59 = vmul.f32 %v1359_v51, %v382_v58 }
 0x518   :  { %403 = vrot.lane.b32.xlu0 %v1536_v59, %s1418_s12 }
 0x58a   :  { %v404_v60 = vpop.permute.xlu0 %403 }
 0x58b   :  { %1235 = vmatmul.mubr.msk.f32.vlgmr.msra.gmra.mrb[2].mxu1 %vm153_vm3, %v404_v60 }
 0x58c   :  { %1318 = vmatpush3.bf16.msra.mxu1 %v1481_v8  ;;  %1256 = vmatprep.mubr.msk.f32.mxu1 %vm1415_vm1, %v1416_v4 }
 0x58d   :  { %1319 = vmatprep.subr.bf16.mxu1 %v1414_v3 }
 0x590   :  { %1321 = vmatpush3.bf16.msra.mxu1 %v1489_v10 }
 0x591   :  { %1328 = vmatprep.subr.bf16.mxu1 %v1414_v3 }
 0x65e   :  { %v473_v62 = vpop.f32.mrb[2].mxu1 }
 0x65f   :  { %v477_v63 = vadd.f32 %v473_v62, %v401_v61  ;;  %v1236_v0 = vpop.f32.mrb[3].mxu1 }
 0x661   :  { %1362 = vtanh.f32 %v477_v63  ;;  %v1139_v2 = vmul.f32 -1.442695, %v477_v63 }
 0x663   :  { %1364 = vpow2.f32 %v1139_v2 }
 0x66b   :  { %v1363_v1 = vpop.eup %1362 }
 0x66c   :  { %487 = vrot.lane.b32.xlu1 %v1363_v1, %s1417_s11 }
 0x66d   :  { %v1365_v5 = vpop.eup %1364 }
 0x66e   :  { %v481_v6 = vadd.f32 1.0, %v1365_v5 }
 0x670   :  { %1366 = vrcp.f32 %v481_v6 }
 0x67a   :  { %v1367_v7 = vpop.eup %1366 }
 0x67b   :  { %v485_v12 = vmul.f32 %v1367_v7, %v378_v56  ;;  %v752_v56 = vld [vmem:[#allocation4 + $0x14] sm:$0xf] }
 0x6de   :  { %v488_v9 = vpop.permute.xlu1 %487 }
 0x6df   :  { %v490_v11 = vmul.f32 %v1367_v7, %v488_v9 }
 0x6e1   :  { %492 = vrot.lane.b32.xlu0 %v490_v11, %s1418_s12  ;;  %v869_v11 = vld [vmem:[#allocation4 + $0x18] sm:$0xf] }
 0x753   :  { %v493_v13 = vpop.permute.xlu0 %492 }
 0x754   :  { %v495_v14 = vadd.f32 %v493_v13, %v485_v12 }
 0x756   :  { %1368 = vtanh.f32 %v495_v14 }
 0x760   :  { %v1369_v15 = vpop.eup %1368 }
 0x761   :  { %498 = vrot.lane.b32.xlu1 %v1369_v15, %s1417_s11 }
 0x7d3   :  { %v499_v16 = vpop.permute.xlu1 %498 }
 0x7d4   :  { %v1550_v17 = vmul.f32 %v1367_v7, %v499_v16 }
 0x7d6   :  { %520 = vrot.lane.b32.xlu0 %v1550_v17, %s1418_s12 }
 0x848   :  { %v521_v18 = vpop.permute.xlu0 %520 }
 0x849   :  { %1246 = vmatmul.mubr.msk.f32.vlgmr.msra.gmra.mrb[6].mxu0 %vm153_vm3, %v521_v18 }
 0x84a   :  { %1324 = vmatpush3.bf16.msra.mxu0 %v1481_v8  ;;  %1267 = vmatprep.mubr.msk.f32.mxu0 %vm1415_vm1, %v1416_v4 }
 0x84b   :  { %1325 = vmatprep.subr.bf16.mxu0 %v1414_v3 }
 0x84e   :  { %1327 = vmatpush3.bf16.msra.mxu0 %v1489_v10 }
 0x84f   :  { %1334 = vmatprep.subr.bf16.mxu0 %v1414_v3 }
 0x91c   :  { %v590_v20 = vpop.f32.mrb[6].mxu0 }
 0x91d   :  { %v594_v21 = vadd.f32 %v590_v20, %v518_v19  ;;  %v1247_v22 = vpop.f32.mrb[7].mxu0 }
 0x91f   :  { %1370 = vtanh.f32 %v594_v21  ;;  %v1141_v24 = vmul.f32 -1.442695, %v594_v21 }
 0x921   :  { %1372 = vpow2.f32 %v1141_v24 }
 0x929   :  { %v1371_v23 = vpop.eup %1370 }
 0x92a   :  { %604 = vrot.lane.b32.xlu1 %v1371_v23, %s1417_s11 }
 0x92b   :  { %v1373_v25 = vpop.eup %1372 }
 0x92c   :  { %v598_v26 = vadd.f32 1.0, %v1373_v25 }
 0x92e   :  { %1374 = vrcp.f32 %v598_v26 }
 0x938   :  { %v1375_v27 = vpop.eup %1374 }
 0x939   :  { %v602_v30 = vmul.f32 %v1375_v27, %v495_v14 }
 0x99c   :  { %v605_v28 = vpop.permute.xlu1 %604 }
 0x99d   :  { %v607_v29 = vmul.f32 %v1375_v27, %v605_v28 }
 0x99f   :  { %609 = vrot.lane.b32.xlu0 %v607_v29, %s1418_s12 }
 0xa11   :  { %v610_v31 = vpop.permute.xlu0 %609 }
 0xa12   :  { %v612_v32 = vadd.f32 %v610_v31, %v602_v30  ;;  %v986_v30 = vld [vmem:[#allocation4 + $0x1c] sm:$0xf] }
 0xa14   :  { %1376 = vtanh.f32 %v612_v32 }
 0xa1e   :  { %v1377_v33 = vpop.eup %1376 }
 0xa1f   :  { %615 = vrot.lane.b32.xlu1 %v1377_v33, %s1417_s11 }
 0xa91   :  { %v616_v34 = vpop.permute.xlu1 %615 }
 0xa92   :  { %v1564_v35 = vmul.f32 %v1375_v27, %v616_v34 }
 0xa94   :  { %637 = vrot.lane.b32.xlu0 %v1564_v35, %s1418_s12 }
 0xb06   :  { %v638_v36 = vpop.permute.xlu0 %637 }
 0xb07   :  { %1257 = vmatmul.mubr.msk.f32.vlgmr.msra.gmra.mrb[4].mxu1 %vm153_vm3, %v638_v36 }
 0xb08   :  { %1330 = vmatpush3.bf16.msra.mxu1 %v1481_v8  ;;  %1278 = vmatprep.mubr.msk.f32.mxu1 %vm1415_vm1, %v1416_v4 }
 0xb09   :  { %1331 = vmatprep.subr.bf16.mxu1 %v1414_v3 }
 0xb0c   :  { %1333 = vmatpush3.bf16.msra.mxu1 %v1489_v10 }
 0xbda   :  { %v707_v39 = vpop.f32.mrb[4].mxu1 }
 0xbdb   :  { %v711_v40 = vadd.f32 %v707_v39, %v635_v38  ;;  %v1258_v41 = vpop.f32.mrb[5].mxu1 }
 0xbdd   :  { %1378 = vtanh.f32 %v711_v40  ;;  %v1143_v43 = vmul.f32 -1.442695, %v711_v40 }
 0xbdf   :  { %1380 = vpow2.f32 %v1143_v43  ;;  %v1135_v43 = vld [vmem:[%s1651_s4] ss:$0 sm:$0xff] }
 0xbe7   :  { %v1379_v42 = vpop.eup %1378 }
 0xbe8   :  { %721 = vrot.lane.b32.xlu1 %v1379_v42, %s1417_s11 }
 0xbe9   :  { %v1381_v44 = vpop.eup %1380 }
 0xbea   :  { %v715_v45 = vadd.f32 1.0, %v1381_v44 }
 0xbec   :  { %1382 = vrcp.f32 %v715_v45 }
 0xbf6   :  { %v1383_v46 = vpop.eup %1382 }
 0xbf7   :  { %v719_v49 = vmul.f32 %v1383_v46, %v612_v32 }
 0xc5a   :  { %v722_v47 = vpop.permute.xlu1 %721 }
 0xc5b   :  { %v724_v48 = vmul.f32 %v1383_v46, %v722_v47 }
 0xc5d   :  { %726 = vrot.lane.b32.xlu0 %v724_v48, %s1418_s12 }
 0xccf   :  { %v727_v50 = vpop.permute.xlu0 %726 }
 0xcd0   :  { %v729_v51 = vadd.f32 %v727_v50, %v719_v49 }
 0xcd2   :  { %1384 = vtanh.f32 %v729_v51 }
 0xcdc   :  { %v1385_v52 = vpop.eup %1384 }
 0xcdd   :  { %732 = vrot.lane.b32.xlu1 %v1385_v52, %s1417_s11 }
 0xd4f   :  { %v733_v53 = vpop.permute.xlu1 %732 }
 0xd50   :  { %v1577_v54 = vmul.f32 %v1383_v46, %v733_v53 }
 0xd52   :  { %754 = vrot.lane.b32.xlu0 %v1577_v54, %s1418_s12 }
 0xdc4   :  { %v755_v55 = vpop.permute.xlu0 %754 }
 0xdc5   :  { %1268 = vmatmul.mubr.msk.f32.vlgmr.msra.gmra.mrb[8].mxu0 %vm153_vm3, %v755_v55 }
 0xdc6   :  { %1336 = vmatpush3.bf16.msra.mxu0 %v1481_v8  ;;  %1289 = vmatprep.mubr.msk.f32.mxu0 %vm1415_vm1, %v1416_v4 }
 0xdc7   :  { %1337 = vmatprep.subr.bf16.mxu0 %v1414_v3 }
 0xdca   :  { %1339 = vmatpush3.bf16.msra.mxu0 %v1489_v10 }
 0xe98   :  { %v824_v57 = vpop.f32.mrb[8].mxu0 }
 0xe99   :  { %v828_v58 = vadd.f32 %v824_v57, %v752_v56  ;;  %v1269_v60 = vpop.f32.mrb[9].mxu0 }
 0xe9b   :  { %1386 = vtanh.f32 %v828_v58  ;;  %v1145_v62 = vmul.f32 -1.442695, %v828_v58 }
 0xe9d   :  { %1388 = vpow2.f32 %v1145_v62 }
 0xea5   :  { %v1387_v61 = vpop.eup %1386 }
 0xea6   :  { %838 = vrot.lane.b32.xlu1 %v1387_v61, %s1417_s11 }
 0xea7   :  { %v1389_v63 = vpop.eup %1388 }
 0xea8   :  { %v832_v0 = vadd.f32 1.0, %v1389_v63 }
 0xeaa   :  { %1390 = vrcp.f32 %v832_v0 }
 0xeb4   :  { %v1391_v8 = vpop.eup %1390 }
 0xeb5   :  { %v836_v3 = vmul.f32 %v1391_v8, %v729_v51 }
 0xf18   :  { %v839_v1 = vpop.permute.xlu1 %838 }
 0xf19   :  { %v841_v4 = vmul.f32 %v1391_v8, %v839_v1 }
 0xf1b   :  { %843 = vrot.lane.b32.xlu0 %v841_v4, %s1418_s12 }
 0xf8d   :  { %v844_v10 = vpop.permute.xlu0 %843 }
 0xf8e   :  { %v846_v2 = vadd.f32 %v844_v10, %v836_v3 }
 0xf90   :  { %1392 = vtanh.f32 %v846_v2 }
 0xf9a   :  { %v1393_v5 = vpop.eup %1392 }
 0xf9b   :  { %849 = vrot.lane.b32.xlu1 %v1393_v5, %s1417_s11 }
0x100d   :  { %v850_v6 = vpop.permute.xlu1 %849 }
0x100e   :  { %v1590_v7 = vmul.f32 %v1391_v8, %v850_v6 }
0x1010   :  { %871 = vrot.lane.b32.xlu0 %v1590_v7, %s1418_s12 }
0x1082   :  { %v872_v9 = vpop.permute.xlu0 %871 }
0x1083   :  { %1279 = vmatmul.mubr.msk.f32.vlgmr.msra.gmra.mrb[6].mxu1 %vm153_vm3, %v872_v9 }
0x1156   :  { %v941_v12 = vpop.f32.mrb[6].mxu1 }
0x1157   :  { %v945_v13 = vadd.f32 %v941_v12, %v869_v11  ;;  %v1280_v14 = vpop.f32.mrb[7].mxu1 }
0x1159   :  { %1394 = vtanh.f32 %v945_v13  ;;  %v1147_v16 = vmul.f32 -1.442695, %v945_v13 }
0x115b   :  { %1396 = vpow2.f32 %v1147_v16 }
0x1163   :  { %v1395_v15 = vpop.eup %1394 }
0x1164   :  { %955 = vrot.lane.b32.xlu1 %v1395_v15, %s1417_s11 }
0x1165   :  { %v1397_v18 = vpop.eup %1396 }
0x1166   :  { %v949_v19 = vadd.f32 1.0, %v1397_v18 }
0x1168   :  { %1398 = vrcp.f32 %v949_v19 }
0x1172   :  { %v1399_v20 = vpop.eup %1398 }
0x1173   :  { %v953_v23 = vmul.f32 %v1399_v20, %v846_v2 }
0x11d6   :  { %v956_v21 = vpop.permute.xlu1 %955 }
0x11d7   :  { %v958_v22 = vmul.f32 %v1399_v20, %v956_v21 }
0x11d9   :  { %960 = vrot.lane.b32.xlu0 %v958_v22, %s1418_s12 }
0x124b   :  { %v961_v24 = vpop.permute.xlu0 %960 }
0x124c   :  { %v963_v25 = vadd.f32 %v961_v24, %v953_v23 }
0x124e   :  { %1400 = vtanh.f32 %v963_v25 }
0x1258   :  { %v1401_v26 = vpop.eup %1400 }
0x1259   :  { %966 = vrot.lane.b32.xlu1 %v1401_v26, %s1417_s11 }
0x12cb   :  { %v967_v27 = vpop.permute.xlu1 %966 }
0x12cc   :  { %v969_v28 = vmul.f32 %v1399_v20, %v967_v27 }
0x12ce   :  { %988 = vrot.lane.b32.xlu0 %v969_v28, %s1418_s12 }
0x1340   :  { %v989_v29 = vpop.permute.xlu0 %988 }
0x1341   :  { %1290 = vmatmul.mubr.msk.f32.vlgmr.msra.gmra.mrb[10].mxu0 %vm153_vm3, %v989_v29 }
0x1414   :  { %v1058_v31 = vpop.f32.mrb[10].mxu0 }
0x1415   :  { %v1062_v32 = vadd.f32 %v1058_v31, %v986_v30  ;;  %v1291_v33 = vpop.f32.mrb[11].mxu0  ;;  %v1114_v31 = vstv %s1652_s5 }
0x1417   :  { %1402 = vtanh.f32 %v1062_v32  ;;  %v1149_v36 = vmul.f32 -1.442695, %v1062_v32 }
0x1419   :  { %1404 = vpow2.f32 %v1149_v36 }
0x1421   :  { %v1403_v34 = vpop.eup %1402 }
0x1422   :  { %1072 = vrot.lane.b32.xlu1 %v1403_v34, %s1417_s11 }
0x1423   :  { %v1405_v38 = vpop.eup %1404 }
0x1424   :  { %v1066_v39 = vadd.f32 1.0, %v1405_v38 }
0x1426   :  { %1406 = vrcp.f32 %v1066_v39 }
0x1430   :  { %v1407_v40 = vpop.eup %1406 }
0x1431   :  { %v1070_v44 = vmul.f32 %v1407_v40, %v963_v25 }
0x1494   :  { %v1073_v41 = vpop.permute.xlu1 %1072 }
0x1495   :  { %v1075_v42 = vmul.f32 %v1407_v40, %v1073_v41 }
0x1497   :  { %1077 = vrot.lane.b32.xlu0 %v1075_v42, %s1418_s12 }
0x149b   :  { %261 = vrot.lane.b32.xlu0 %v1135_v43, %s1419_s17 }
0x1509   :  { %v1078_v45 = vpop.permute.xlu0 %1077 }
0x150a   :  { %v1080_v46 = vadd.f32 %v1078_v45, %v1070_v44 }
0x150c   :  { %1408 = vtanh.f32 %v1080_v46 }
0x150d   :  { %v262_v48 = vpop.permute.xlu0 %261 }
0x150e   :  { %v264_v49 = vmul.f32 %v262_v48, %v1522_v37  ;;  %v385_v50 = vmul.f32 %v1536_v59, %v262_v48  ;;  %v619_v57 = vmul.f32 %v1564_v35, %v262_v48  ;;  %v502_v58 = vmul.f32 %v1550_v17, %v262_v48 }
0x150f   :  { %v970_v37 = vmul.f32 %v969_v28, %v262_v48  ;;  %v736_v59 = vmul.f32 %v1577_v54, %v262_v48  ;;  %v853_v61 = vmul.f32 %v1590_v7, %v262_v48  ;;  %v274_v17 = vlaneseq }
0x1511   :  { %v275_v35 = vand.u32 127, %v274_v17  ;;  %v277_v63 = vshrl.u32 %v274_v17, 7 }
0x1513   :  { %v278_v0 = vsub.s32 %v275_v35, %v277_v63 }
0x1516   :  { %v1409_v47 = vpop.eup %1408 }
0x1517   :  { %1083 = vrot.lane.b32.xlu1 %v1409_v47, %s1417_s11 }
0x151b   :  { %266 = vrot.lane.b32.xlu1 %v264_v49, %s1418_s12 }
0x151f   :  { %387 = vrot.lane.b32.xlu1 %v385_v50, %s1418_s12 }
0x1589   :  { %v1084_v51 = vpop.permute.xlu1 %1083 }
0x158a   :  { %v1086_v60 = vmul.f32 %v1407_v40, %v1084_v51 }
0x158c   :  { %v1087_v62 = vmul.f32 %v1086_v60, %v262_v48 }
0x158d   :  { %v267_v52 = vpop.permute.xlu1 %266 }
0x158e   :  { %v270_v53 = vsel %vm28_vm2, %v267_v52, 0.0 }
0x158f   :  { %271 = vadd.xlane.f32.xlu0 %v270_v53 }
0x1591   :  { %v388_v55 = vpop.permute.xlu1 %387 }
0x1592   :  { %v390_v56 = vsel %vm28_vm2, %v388_v55, 0.0 }
0x1593   :  { %391 = vadd.xlane.f32.xlu1 %v390_v56 }
0x15a4   :  { %621 = vrot.lane.b32.xlu1 %v619_v57, %s1418_s12 }
0x15a5   :  { %504 = vrot.lane.b32.xlu0 %v502_v58, %s1418_s12 }
0x15a8   :  { %972 = vrot.lane.b32.xlu1 %v970_v37, %s1418_s12 }
0x15a9   :  { %738 = vrot.lane.b32.xlu0 %v736_v59, %s1418_s12 }
0x15ad   :  { %855 = vrot.lane.b32.xlu0 %v853_v61, %s1418_s12 }
0x15b1   :  { %1089 = vrot.lane.b32.xlu0 %v1087_v62, %s1418_s12 }
0x161c   :  { %v272_v8 = vpop.xlane.xlu0 %271 }
0x161d   :  { %v279_v1 = vrot.slane %v272_v8, %v278_v0 }
0x161f   :  { %282 = vst.msk [vmem:[#allocation5] sm:$0x1] %vm281_vm4, %v279_v1 }
0x1620   :  { %v505_v54 = vpop.permute.xlu0 %504  ;;  %v392_v4 = vpop.xlane.xlu1 %391 }
0x1621   :  { %v397_v3 = vrot.slane %v392_v4, %v278_v0  ;;  %v507_v10 = vsel %vm28_vm2, %v505_v54, 0.0 }
0x1622   :  { %508 = vadd.xlane.f32.xlu1 %v507_v10 }
0x1623   :  { %399 = vst.msk [vmem:[#allocation5 + $0x1] sm:$0x1] %vm281_vm4, %v397_v3 }
0x1624   :  { %v739_v2 = vpop.permute.xlu0 %738  ;;  %v622_v5 = vpop.permute.xlu1 %621 }
0x1625   :  { %v624_v6 = vsel %vm28_vm2, %v622_v5, 0.0  ;;  %v741_v11 = vsel %vm28_vm2, %v739_v2, 0.0 }
0x1626   :  { %625 = vadd.xlane.f32.xlu0 %v624_v6 }
0x1628   :  { %v856_v7 = vpop.permute.xlu0 %855  ;;  %v973_v12 = vpop.permute.xlu1 %972 }
0x1629   :  { %v858_v9 = vsel %vm28_vm2, %v856_v7, 0.0  ;;  %v975_v15 = vsel %vm28_vm2, %v973_v12, 0.0 }
0x162a   :  { %859 = vadd.xlane.f32.xlu1 %v858_v9  ;;  %742 = vadd.xlane.f32.xlu0 %v741_v11 }
0x162c   :  { %v1090_v13 = vpop.permute.xlu0 %1089 }
0x162d   :  { %v1092_v14 = vsel %vm28_vm2, %v1090_v13, 0.0 }
0x162e   :  { %1093 = vadd.xlane.f32.xlu1 %v1092_v14  ;;  %976 = vadd.xlane.f32.xlu0 %v975_v15 }
0x163f   :  { %1108 = vrot.lane.b32.xlu1 %v1080_v46, %s1419_s17 }
0x1644   :  { %1103 = vrot.lane.b32.xlu0 %v1086_v60, %s1418_s12 }
0x16af   :  { %v509_v16 = vpop.xlane.xlu1 %508 }
0x16b0   :  { %v514_v18 = vrot.slane %v509_v16, %v278_v0 }
0x16b2   :  { %516 = vst.msk [vmem:[#allocation5 + $0x2] sm:$0x1] %vm281_vm4, %v514_v18 }
0x16b3   :  { %v626_v19 = vpop.xlane.xlu0 %625 }
0x16b4   :  { %v631_v20 = vrot.slane %v626_v19, %v278_v0 }
0x16b6   :  { %633 = vst.msk [vmem:[#allocation5 + $0x3] sm:$0x1] %vm281_vm4, %v631_v20 }
0x16b7   :  { %v743_v21 = vpop.xlane.xlu0 %742  ;;  %v860_v22 = vpop.xlane.xlu1 %859 }
0x16b8   :  { %v748_v23 = vrot.slane %v743_v21, %v278_v0  ;;  %v865_v24 = vrot.slane %v860_v22, %v278_v0 }
0x16ba   :  { %750 = vst.msk [vmem:[#allocation5 + $0x4] sm:$0x1] %vm281_vm4, %v748_v23  ;;  %867 = vst.msk [vmem:[#allocation5 + $0x5] sm:$0x1] %vm281_vm4, %v865_v24 }
0x16bb   :  { %v977_v25 = vpop.xlane.xlu0 %976  ;;  %v1094_v26 = vpop.xlane.xlu1 %1093 }
0x16bc   :  { %v982_v27 = vrot.slane %v977_v25, %v278_v0  ;;  %v1099_v28 = vrot.slane %v1094_v26, %v278_v0 }
0x16be   :  { %984 = vst.msk [vmem:[#allocation5 + $0x6] sm:$0x1] %vm281_vm4, %v982_v27  ;;  %1101 = vst.msk [vmem:[#allocation5 + $0x7] sm:$0x1] %vm281_vm4, %v1099_v28 }
0x16bf   :  { %v1104_v29 = vpop.permute.xlu0 %1103  ;;  %v1109_v30 = vpop.permute.xlu1 %1108 }
0x16c0   :  { %1106 = vst.msk [vmem:[#allocation2] sm:$0xf] %vm28_vm2, %v1104_v29  ;;  %1111 = vst.msk [vmem:[#allocation3] sm:$0xf] %vm28_vm2, %v1109_v30 }
0x16c5   :  { %v1112_v32 = vld [vmem:[#allocation5] sm:$0xff] }
0x16c6   :  { %v1115_v33 = vadd.f32 %v1114_v31, %v1112_v32 }
0x16c8   :  { %v1150_v34 = vmul.f32 -1.442695, %v1115_v33 }
0x16ca   :  { %1410 = vpow2.f32 %v1150_v34 }
0x16d4   :  { %v1411_v36 = vpop.eup %1410 }
0x16d5   :  { %v1119_v38 = vadd.f32 1.0, %v1411_v36 }
0x16d7   :  { %1412 = vrcp.f32 %v1119_v38 }
0x16e1   :  { %v1413_v39 = vpop.eup %1412 }
0x16e2   :  { %1123 = vst.msk [vmem:[%s1653_s6] sm:$0xff] %vm1122_vm5, %v1413_v39 }

// kernel: tpu_custom_call.1
= control target key start
LH: loop header
LB: loop body
LE: loop exit
PB: predicated region body
PF: predicated region fallthrough
CT: control target
= control target key end

     0   :  { %vm43_vm0 = vcmask 64512   ;;  %v1414_v3 = vmov 0.0|0.0   ;;  %vm1415_vm1 = vmmov 0   ;;  %v1416_v4 = vmov 0.0   ;;  %s1417_s11 = smov 64   ;;  %s1418_s12 = smov 32   ;;  %s1647_s1 = inlined_call_operand.vmem [shape: f32[8,128], index: 1, kind: input, shape index: {}]   ;;  %s1648_s0 = inlined_call_operand.vmem [shape: f32[1,32,8], index: 0, kind: input, shape index: {}]   ;;  %s1649_s2 = inlined_call_operand.vmem [shape: f32[32,128], index: 2, kind: input, shape index: {}]   ;;  %s1650_s3 = inlined_call_operand.vmem [shape: f32[1,128], index: 3, kind: input, shape index: {}]   ;;  %s1651_s4 = inlined_call_operand.vmem [shape: f32[1,32], index: 4, kind: input, shape index: {}]   ;;  %s1652_s5 = inlined_call_operand.<no memory space> [shape: f32[1,1], index: 5, kind: input, shape index: {}]   ;;  %s1653_s6 = inlined_call_operand.vmem [shape: f32[1,8,4], index: 6, kind: output, shape index: {}]  }
   0x1   :  { %v35_v0 = vld [vmem:[%s1647_s1] sm:$0xff]  ;;  %v32_v2 = vld [vmem:[%s1648_s0 + $0x8] sm:$0xff]  ;;  %1292 = vmatprep.subr.bf16.mxu1 %v1414_v3  ;;  %1212 = vmatprep.mubr.msk.f32.mxu1 %vm1415_vm1, %v1416_v4  ;;  %vm28_vm2 = vcmask 257024   ;;  %v147_v7 = vld [vmem:[%s1649_s2 + $0x10] sm:$0xff]  ;;  %vm153_vm3 = vcmask 261120   ;;  %s1419_s17 = smov 96  }
   0x2   :  { %v31_v1 = vld [vmem:[%s1648_s0] sm:$0xff]  ;;  %1196 = vmatprep.subr.mxu0 %v35_v0  ;;  %v146_v6 = vld [vmem:[%s1649_s2 + $0x8] sm:$0xff]  ;;  %29 = vst.msk [vmem:[#allocation2] sm:$0xf] %vm28_vm2, %v1416_v4  ;;  %30 = vst.msk [vmem:[#allocation3] sm:$0xf] %vm28_vm2, %v1416_v4 }
   0x3   :  { %1198 = vmatprep.mubr.msk.f32.mxu0 %vm43_vm0, %v31_v1  ;;  %v145_v5 = vld [vmem:[%s1649_s2] sm:$0xff]  ;;  %1197 = vmatpush3.msra.mxu0 %v35_v0  ;;  %v148_v9 = vld [vmem:[%s1649_s2 + $0x18] sm:$0xff]  ;;  %v33_v33 = vld [vmem:[%s1648_s0 + $0x10] sm:$0xff]  ;;  %vm281_vm4 = vcmask 24576   ;;  %vm1122_vm5 = vcmask 31744  }
   0x4   :  { %v1481_v8 = vpack.c.bf16 %v146_v6, %v145_v5  ;;  %1199 = vmatmul.mubr.msk.f32.vlgmr.msra.gmra.mrb[0].mxu0 %vm43_vm0, %v32_v2  ;;  %1298 = vmatprep.subr.bf16.mxu0 %v1414_v3  ;;  %v1489_v10 = vpack.c.bf16 %v148_v9, %v147_v7  ;;  %v1128_v12 = vld [vmem:[%s1650_s3] ss:$0 sm:$0xff]  ;;  %v34_v34 = vld [vmem:[%s1648_s0 + $0x18] sm:$0xff] }
   0x5   :  { %1201 = vmatprep.mubr.msk.f32.mxu0 %vm43_vm0, %v33_v33 }
   0x6   :  { %1294 = vmatpush3.bf16.msra.mxu1 %v1481_v8  ;;  %1300 = vmatpush3.bf16.msra.mxu0 %v1481_v8 }
   0x7   :  { %1295 = vmatprep.subr.bf16.mxu1 %v1414_v3  ;;  %1301 = vmatprep.subr.bf16.mxu0 %v1414_v3 }
   0x8   :  { %1202 = vmatmul.mubr.msk.f32.gmra.mrb[2].mxu0 %vm43_vm0, %v34_v34 }
   0x9   :  { %v150_v11 = vld [vmem:[#allocation2] sm:$0xf]  ;;  %v151_v22 = vld [vmem:[#allocation3] sm:$0xf]  ;;  %1223 = vmatprep.mubr.msk.f32.mxu0 %vm1415_vm1, %v1416_v4 }
   0xa   :  { %1297 = vmatpush3.bf16.msra.mxu1 %v1489_v10  ;;  %1303 = vmatpush3.bf16.msra.mxu0 %v1489_v10 }
   0xb   :  { %1304 = vmatprep.subr.bf16.mxu1 %v1414_v3  ;;  %1310 = vmatprep.subr.bf16.mxu0 %v1414_v3 }
   0xd   :  { %1213 = vmatmul.mubr.msk.f32.vlgmr.msra.gmra.mrb[0].mxu1 %vm153_vm3, %v150_v11 }
   0xe   :  { %1306 = vmatpush3.bf16.msra.mxu1 %v1481_v8  ;;  %1234 = vmatprep.mubr.msk.f32.mxu1 %vm1415_vm1, %v1416_v4 }
   0xf   :  { %1307 = vmatprep.subr.bf16.mxu1 %v1414_v3 }
  0x12   :  { %1309 = vmatpush3.bf16.msra.mxu1 %v1489_v10 }
  0x13   :  { %1316 = vmatprep.subr.bf16.mxu1 %v1414_v3 }
  0xd7   :  { %v1200_v13 = vpop.f32.mrb[0].mxu0 }
  0xd8   :  { %v128_v14 = vadd.f32 %v1200_v13, %v1128_v12  ;;  %v122_v15 = vpop.f32.mrb[1].mxu0 }
  0xd9   :  { %v123_v16 = vadd.f32 %v1128_v12, %v122_v15 }
  0xda   :  { %142 = vst [vmem:[#allocation4 + $0x8] sm:$0xff] %v128_v14 }
  0xdb   :  { %141 = vst [vmem:[#allocation4] sm:$0xff] %v123_v16  ;;  %v1203_v38 = vpop.f32.mrb[2].mxu0 }
  0xdc   :  { %v138_v39 = vadd.f32 %v1203_v38, %v1128_v12  ;;  %v132_v40 = vpop.f32.mrb[3].mxu0 }
  0xdd   :  { %v133_v41 = vadd.f32 %v1128_v12, %v132_v40 }
  0xde   :  { %144 = vst [vmem:[#allocation4 + $0x18] sm:$0xff] %v138_v39 }
  0xdf   :  { %143 = vst [vmem:[#allocation4 + $0x10] sm:$0xff] %v133_v41 }
  0xe0   :  { %v223_v17 = vpop.f32.mrb[0].mxu1 }
  0xe1   :  { %v1214_v18 = vpop.f32.mrb[1].mxu1  ;;  %v401_v61 = vld [vmem:[#allocation4 + $0x8] sm:$0xf] }
  0xe2   :  { %v152_v19 = vld [vmem:[#allocation4] sm:$0xf]  ;;  %v284_v43 = vld [vmem:[#allocation4 + $0x4] sm:$0xf] }
  0xe3   :  { %v227_v20 = vadd.f32 %v223_v17, %v152_v19  ;;  %v518_v19 = vld [vmem:[#allocation4 + $0xc] sm:$0xf] }
  0xe5   :  { %1346 = vtanh.f32 %v227_v20  ;;  %v1134_v23 = vmul.f32 -1.442695, %v227_v20 }
  0xe6   :  { %v635_v38 = vld [vmem:[#allocation4 + $0x10] sm:$0xf] }
  0xe7   :  { %1348 = vpow2.f32 %v1134_v23 }
  0xef   :  { %v1347_v21 = vpop.eup %1346 }
  0xf0   :  { %241 = vrot.lane.b32.xlu0 %v1347_v21, %s1417_s11 }
  0xf1   :  { %v1349_v24 = vpop.eup %1348 }
  0xf2   :  { %v231_v25 = vadd.f32 1.0, %v1349_v24 }
  0xf4   :  { %236 = vrot.lane.b32.xlu0 %v151_v22, %s1418_s12  ;;  %1350 = vrcp.f32 %v231_v25 }
  0xfe   :  { %v1351_v26 = vpop.eup %1350 }
 0x162   :  { %v242_v27 = vpop.permute.xlu0 %241 }
 0x163   :  { %v244_v28 = vmul.f32 %v1351_v26, %v242_v27 }
 0x165   :  { %246 = vrot.lane.b32.xlu1 %v244_v28, %s1418_s12 }
 0x166   :  { %v237_v29 = vpop.permute.xlu0 %236 }
 0x167   :  { %v239_v30 = vmul.f32 %v1351_v26, %v237_v29 }
 0x1d7   :  { %v247_v31 = vpop.permute.xlu1 %246 }
 0x1d8   :  { %v249_v32 = vadd.f32 %v247_v31, %v239_v30 }
 0x1da   :  { %1352 = vtanh.f32 %v249_v32 }
 0x1e4   :  { %v1353_v35 = vpop.eup %1352 }
 0x1e5   :  { %252 = vrot.lane.b32.xlu1 %v1353_v35, %s1417_s11 }
 0x257   :  { %v253_v36 = vpop.permute.xlu1 %252 }
 0x258   :  { %v1522_v37 = vmul.f32 %v1351_v26, %v253_v36 }
 0x25a   :  { %286 = vrot.lane.b32.xlu0 %v1522_v37, %s1418_s12 }
 0x2cc   :  { %v287_v42 = vpop.permute.xlu0 %286 }
 0x2cd   :  { %1224 = vmatmul.mubr.msk.f32.vlgmr.msra.gmra.mrb[4].mxu0 %vm153_vm3, %v287_v42 }
 0x2ce   :  { %1312 = vmatpush3.bf16.msra.mxu0 %v1481_v8  ;;  %1245 = vmatprep.mubr.msk.f32.mxu0 %vm1415_vm1, %v1416_v4 }
 0x2cf   :  { %1313 = vmatprep.subr.bf16.mxu0 %v1414_v3 }
 0x2d2   :  { %1315 = vmatpush3.bf16.msra.mxu0 %v1489_v10 }
 0x2d3   :  { %1322 = vmatprep.subr.bf16.mxu0 %v1414_v3 }
 0x3a0   :  { %v356_v44 = vpop.f32.mrb[4].mxu0 }
 0x3a1   :  { %v360_v45 = vadd.f32 %v356_v44, %v284_v43  ;;  %v1225_v46 = vpop.f32.mrb[5].mxu0 }
 0x3a3   :  { %1354 = vtanh.f32 %v360_v45  ;;  %v1137_v48 = vmul.f32 -1.442695, %v360_v45 }
 0x3a5   :  { %1356 = vpow2.f32 %v1137_v48 }
 0x3ad   :  { %v1355_v47 = vpop.eup %1354 }
 0x3ae   :  { %370 = vrot.lane.b32.xlu1 %v1355_v47, %s1417_s11 }
 0x3af   :  { %v1357_v49 = vpop.eup %1356 }
 0x3b0   :  { %v364_v50 = vadd.f32 1.0, %v1357_v49 }
 0x3b2   :  { %1358 = vrcp.f32 %v364_v50 }
 0x3bc   :  { %v1359_v51 = vpop.eup %1358 }
 0x3bd   :  { %v368_v54 = vmul.f32 %v1359_v51, %v249_v32 }
 0x420   :  { %v371_v52 = vpop.permute.xlu1 %370 }
 0x421   :  { %v373_v53 = vmul.f32 %v1359_v51, %v371_v52 }
 0x423   :  { %375 = vrot.lane.b32.xlu0 %v373_v53, %s1418_s12 }
 0x495   :  { %v376_v55 = vpop.permute.xlu0 %375 }
 0x496   :  { %v378_v56 = vadd.f32 %v376_v55, %v368_v54 }
 0x498   :  { %1360 = vtanh.f32 %v378_v56 }
 0x4a2   :  { %v1361_v57 = vpop.eup %1360 }
 0x4a3   :  { %381 = vrot.lane.b32.xlu1 %v1361_v57, %s1417_s11 }
 0x515   :  { %v382_v58 = vpop.permute.xlu1 %381 }
 0x516   :  { %v1536_v59 = vmul.f32 %v1359_v51, %v382_v58 }
 0x518   :  { %403 = vrot.lane.b32.xlu0 %v1536_v59, %s1418_s12 }
 0x58a   :  { %v404_v60 = vpop.permute.xlu0 %403 }
 0x58b   :  { %1235 = vmatmul.mubr.msk.f32.vlgmr.msra.gmra.mrb[2].mxu1 %vm153_vm3, %v404_v60 }
 0x58c   :  { %1318 = vmatpush3.bf16.msra.mxu1 %v1481_v8  ;;  %1256 = vmatprep.mubr.msk.f32.mxu1 %vm1415_vm1, %v1416_v4 }
 0x58d   :  { %1319 = vmatprep.subr.bf16.mxu1 %v1414_v3 }
 0x590   :  { %1321 = vmatpush3.bf16.msra.mxu1 %v1489_v10 }
 0x591   :  { %1328 = vmatprep.subr.bf16.mxu1 %v1414_v3 }
 0x65e   :  { %v473_v62 = vpop.f32.mrb[2].mxu1 }
 0x65f   :  { %v477_v63 = vadd.f32 %v473_v62, %v401_v61  ;;  %v1236_v0 = vpop.f32.mrb[3].mxu1 }
 0x661   :  { %1362 = vtanh.f32 %v477_v63  ;;  %v1139_v2 = vmul.f32 -1.442695, %v477_v63 }
 0x663   :  { %1364 = vpow2.f32 %v1139_v2 }
 0x66b   :  { %v1363_v1 = vpop.eup %1362 }
 0x66c   :  { %487 = vrot.lane.b32.xlu1 %v1363_v1, %s1417_s11 }
 0x66d   :  { %v1365_v5 = vpop.eup %1364 }
 0x66e   :  { %v481_v6 = vadd.f32 1.0, %v1365_v5 }
 0x670   :  { %1366 = vrcp.f32 %v481_v6 }
 0x67a   :  { %v1367_v7 = vpop.eup %1366 }
 0x67b   :  { %v485_v12 = vmul.f32 %v1367_v7, %v378_v56  ;;  %v752_v56 = vld [vmem:[#allocation4 + $0x14] sm:$0xf] }
 0x6de   :  { %v488_v9 = vpop.permute.xlu1 %487 }
 0x6df   :  { %v490_v11 = vmul.f32 %v1367_v7, %v488_v9 }
 0x6e1   :  { %492 = vrot.lane.b32.xlu0 %v490_v11, %s1418_s12  ;;  %v869_v11 = vld [vmem:[#allocation4 + $0x18] sm:$0xf] }
 0x753   :  { %v493_v13 = vpop.permute.xlu0 %492 }
 0x754   :  { %v495_v14 = vadd.f32 %v493_v13, %v485_v12 }
 0x756   :  { %1368 = vtanh.f32 %v495_v14 }
 0x760   :  { %v1369_v15 = vpop.eup %1368 }
 0x761   :  { %498 = vrot.lane.b32.xlu1 %v1369_v15, %s1417_s11 }
 0x7d3   :  { %v499_v16 = vpop.permute.xlu1 %498 }
 0x7d4   :  { %v1550_v17 = vmul.f32 %v1367_v7, %v499_v16 }
 0x7d6   :  { %520 = vrot.lane.b32.xlu0 %v1550_v17, %s1418_s12 }
 0x848   :  { %v521_v18 = vpop.permute.xlu0 %520 }
 0x849   :  { %1246 = vmatmul.mubr.msk.f32.vlgmr.msra.gmra.mrb[6].mxu0 %vm153_vm3, %v521_v18 }
 0x84a   :  { %1324 = vmatpush3.bf16.msra.mxu0 %v1481_v8  ;;  %1267 = vmatprep.mubr.msk.f32.mxu0 %vm1415_vm1, %v1416_v4 }
 0x84b   :  { %1325 = vmatprep.subr.bf16.mxu0 %v1414_v3 }
 0x84e   :  { %1327 = vmatpush3.bf16.msra.mxu0 %v1489_v10 }
 0x84f   :  { %1334 = vmatprep.subr.bf16.mxu0 %v1414_v3 }
 0x91c   :  { %v590_v20 = vpop.f32.mrb[6].mxu0 }
 0x91d   :  { %v594_v21 = vadd.f32 %v590_v20, %v518_v19  ;;  %v1247_v22 = vpop.f32.mrb[7].mxu0 }
 0x91f   :  { %1370 = vtanh.f32 %v594_v21  ;;  %v1141_v24 = vmul.f32 -1.442695, %v594_v21 }
 0x921   :  { %1372 = vpow2.f32 %v1141_v24 }
 0x929   :  { %v1371_v23 = vpop.eup %1370 }
 0x92a   :  { %604 = vrot.lane.b32.xlu1 %v1371_v23, %s1417_s11 }
 0x92b   :  { %v1373_v25 = vpop.eup %1372 }
 0x92c   :  { %v598_v26 = vadd.f32 1.0, %v1373_v25 }
 0x92e   :  { %1374 = vrcp.f32 %v598_v26 }
 0x938   :  { %v1375_v27 = vpop.eup %1374 }
 0x939   :  { %v602_v30 = vmul.f32 %v1375_v27, %v495_v14 }
 0x99c   :  { %v605_v28 = vpop.permute.xlu1 %604 }
 0x99d   :  { %v607_v29 = vmul.f32 %v1375_v27, %v605_v28 }
 0x99f   :  { %609 = vrot.lane.b32.xlu0 %v607_v29, %s1418_s12 }
 0xa11   :  { %v610_v31 = vpop.permute.xlu0 %609 }
 0xa12   :  { %v612_v32 = vadd.f32 %v610_v31, %v602_v30  ;;  %v986_v30 = vld [vmem:[#allocation4 + $0x1c] sm:$0xf] }
 0xa14   :  { %1376 = vtanh.f32 %v612_v32 }
 0xa1e   :  { %v1377_v33 = vpop.eup %1376 }
 0xa1f   :  { %615 = vrot.lane.b32.xlu1 %v1377_v33, %s1417_s11 }
 0xa91   :  { %v616_v34 = vpop.permute.xlu1 %615 }
 0xa92   :  { %v1564_v35 = vmul.f32 %v1375_v27, %v616_v34 }
 0xa94   :  { %637 = vrot.lane.b32.xlu0 %v1564_v35, %s1418_s12 }
 0xb06   :  { %v638_v36 = vpop.permute.xlu0 %637 }
 0xb07   :  { %1257 = vmatmul.mubr.msk.f32.vlgmr.msra.gmra.mrb[4].mxu1 %vm153_vm3, %v638_v36 }
 0xb08   :  { %1330 = vmatpush3.bf16.msra.mxu1 %v1481_v8  ;;  %1278 = vmatprep.mubr.msk.f32.mxu1 %vm1415_vm1, %v1416_v4 }
 0xb09   :  { %1331 = vmatprep.subr.bf16.mxu1 %v1414_v3 }
 0xb0c   :  { %1333 = vmatpush3.bf16.msra.mxu1 %v1489_v10 }
 0xbda   :  { %v707_v39 = vpop.f32.mrb[4].mxu1 }
 0xbdb   :  { %v711_v40 = vadd.f32 %v707_v39, %v635_v38  ;;  %v1258_v41 = vpop.f32.mrb[5].mxu1 }
 0xbdd   :  { %1378 = vtanh.f32 %v711_v40  ;;  %v1143_v43 = vmul.f32 -1.442695, %v711_v40 }
 0xbdf   :  { %1380 = vpow2.f32 %v1143_v43  ;;  %v1135_v43 = vld [vmem:[%s1651_s4] ss:$0 sm:$0xff] }
 0xbe7   :  { %v1379_v42 = vpop.eup %1378 }
 0xbe8   :  { %721 = vrot.lane.b32.xlu1 %v1379_v42, %s1417_s11 }
 0xbe9   :  { %v1381_v44 = vpop.eup %1380 }
 0xbea   :  { %v715_v45 = vadd.f32 1.0, %v1381_v44 }
 0xbec   :  { %1382 = vrcp.f32 %v715_v45 }
 0xbf6   :  { %v1383_v46 = vpop.eup %1382 }
 0xbf7   :  { %v719_v49 = vmul.f32 %v1383_v46, %v612_v32 }
 0xc5a   :  { %v722_v47 = vpop.permute.xlu1 %721 }
 0xc5b   :  { %v724_v48 = vmul.f32 %v1383_v46, %v722_v47 }
 0xc5d   :  { %726 = vrot.lane.b32.xlu0 %v724_v48, %s1418_s12 }
 0xccf   :  { %v727_v50 = vpop.permute.xlu0 %726 }
 0xcd0   :  { %v729_v51 = vadd.f32 %v727_v50, %v719_v49 }
 0xcd2   :  { %1384 = vtanh.f32 %v729_v51 }
 0xcdc   :  { %v1385_v52 = vpop.eup %1384 }
 0xcdd   :  { %732 = vrot.lane.b32.xlu1 %v1385_v52, %s1417_s11 }
 0xd4f   :  { %v733_v53 = vpop.permute.xlu1 %732 }
 0xd50   :  { %v1577_v54 = vmul.f32 %v1383_v46, %v733_v53 }
 0xd52   :  { %754 = vrot.lane.b32.xlu0 %v1577_v54, %s1418_s12 }
 0xdc4   :  { %v755_v55 = vpop.permute.xlu0 %754 }
 0xdc5   :  { %1268 = vmatmul.mubr.msk.f32.vlgmr.msra.gmra.mrb[8].mxu0 %vm153_vm3, %v755_v55 }
 0xdc6   :  { %1336 = vmatpush3.bf16.msra.mxu0 %v1481_v8  ;;  %1289 = vmatprep.mubr.msk.f32.mxu0 %vm1415_vm1, %v1416_v4 }
 0xdc7   :  { %1337 = vmatprep.subr.bf16.mxu0 %v1414_v3 }
 0xdca   :  { %1339 = vmatpush3.bf16.msra.mxu0 %v1489_v10 }
 0xe98   :  { %v824_v57 = vpop.f32.mrb[8].mxu0 }
 0xe99   :  { %v828_v58 = vadd.f32 %v824_v57, %v752_v56  ;;  %v1269_v60 = vpop.f32.mrb[9].mxu0 }
 0xe9b   :  { %1386 = vtanh.f32 %v828_v58  ;;  %v1145_v62 = vmul.f32 -1.442695, %v828_v58 }
 0xe9d   :  { %1388 = vpow2.f32 %v1145_v62 }
 0xea5   :  { %v1387_v61 = vpop.eup %1386 }
 0xea6   :  { %838 = vrot.lane.b32.xlu1 %v1387_v61, %s1417_s11 }
 0xea7   :  { %v1389_v63 = vpop.eup %1388 }
 0xea8   :  { %v832_v0 = vadd.f32 1.0, %v1389_v63 }
 0xeaa   :  { %1390 = vrcp.f32 %v832_v0 }
 0xeb4   :  { %v1391_v8 = vpop.eup %1390 }
 0xeb5   :  { %v836_v3 = vmul.f32 %v1391_v8, %v729_v51 }
 0xf18   :  { %v839_v1 = vpop.permute.xlu1 %838 }
 0xf19   :  { %v841_v4 = vmul.f32 %v1391_v8, %v839_v1 }
 0xf1b   :  { %843 = vrot.lane.b32.xlu0 %v841_v4, %s1418_s12 }
 0xf8d   :  { %v844_v10 = vpop.permute.xlu0 %843 }
 0xf8e   :  { %v846_v2 = vadd.f32 %v844_v10, %v836_v3 }
 0xf90   :  { %1392 = vtanh.f32 %v846_v2 }
 0xf9a   :  { %v1393_v5 = vpop.eup %1392 }
 0xf9b   :  { %849 = vrot.lane.b32.xlu1 %v1393_v5, %s1417_s11 }
0x100d   :  { %v850_v6 = vpop.permute.xlu1 %849 }
0x100e   :  { %v1590_v7 = vmul.f32 %v1391_v8, %v850_v6 }
0x1010   :  { %871 = vrot.lane.b32.xlu0 %v1590_v7, %s1418_s12 }
0x1082   :  { %v872_v9 = vpop.permute.xlu0 %871 }
0x1083   :  { %1279 = vmatmul.mubr.msk.f32.vlgmr.msra.gmra.mrb[6].mxu1 %vm153_vm3, %v872_v9 }
0x1156   :  { %v941_v12 = vpop.f32.mrb[6].mxu1 }
0x1157   :  { %v945_v13 = vadd.f32 %v941_v12, %v869_v11  ;;  %v1280_v14 = vpop.f32.mrb[7].mxu1 }
0x1159   :  { %1394 = vtanh.f32 %v945_v13  ;;  %v1147_v16 = vmul.f32 -1.442695, %v945_v13 }
0x115b   :  { %1396 = vpow2.f32 %v1147_v16 }
0x1163   :  { %v1395_v15 = vpop.eup %1394 }
0x1164   :  { %955 = vrot.lane.b32.xlu1 %v1395_v15, %s1417_s11 }
0x1165   :  { %v1397_v18 = vpop.eup %1396 }
0x1166   :  { %v949_v19 = vadd.f32 1.0, %v1397_v18 }
0x1168   :  { %1398 = vrcp.f32 %v949_v19 }
0x1172   :  { %v1399_v20 = vpop.eup %1398 }
0x1173   :  { %v953_v23 = vmul.f32 %v1399_v20, %v846_v2 }
0x11d6   :  { %v956_v21 = vpop.permute.xlu1 %955 }
0x11d7   :  { %v958_v22 = vmul.f32 %v1399_v20, %v956_v21 }
0x11d9   :  { %960 = vrot.lane.b32.xlu0 %v958_v22, %s1418_s12 }
0x124b   :  { %v961_v24 = vpop.permute.xlu0 %960 }
0x124c   :  { %v963_v25 = vadd.f32 %v961_v24, %v953_v23 }
0x124e   :  { %1400 = vtanh.f32 %v963_v25 }
0x1258   :  { %v1401_v26 = vpop.eup %1400 }
0x1259   :  { %966 = vrot.lane.b32.xlu1 %v1401_v26, %s1417_s11 }
0x12cb   :  { %v967_v27 = vpop.permute.xlu1 %966 }
0x12cc   :  { %v969_v28 = vmul.f32 %v1399_v20, %v967_v27 }
0x12ce   :  { %988 = vrot.lane.b32.xlu0 %v969_v28, %s1418_s12 }
0x1340   :  { %v989_v29 = vpop.permute.xlu0 %988 }
0x1341   :  { %1290 = vmatmul.mubr.msk.f32.vlgmr.msra.gmra.mrb[10].mxu0 %vm153_vm3, %v989_v29 }
0x1414   :  { %v1058_v31 = vpop.f32.mrb[10].mxu0 }
0x1415   :  { %v1062_v32 = vadd.f32 %v1058_v31, %v986_v30  ;;  %v1291_v33 = vpop.f32.mrb[11].mxu0  ;;  %v1114_v31 = vstv %s1652_s5 }
0x1417   :  { %1402 = vtanh.f32 %v1062_v32  ;;  %v1149_v36 = vmul.f32 -1.442695, %v1062_v32 }
0x1419   :  { %1404 = vpow2.f32 %v1149_v36 }
0x1421   :  { %v1403_v34 = vpop.eup %1402 }
0x1422   :  { %1072 = vrot.lane.b32.xlu1 %v1403_v34, %s1417_s11 }
0x1423   :  { %v1405_v38 = vpop.eup %1404 }
0x1424   :  { %v1066_v39 = vadd.f32 1.0, %v1405_v38 }
0x1426   :  { %1406 = vrcp.f32 %v1066_v39 }
0x1430   :  { %v1407_v40 = vpop.eup %1406 }
0x1431   :  { %v1070_v44 = vmul.f32 %v1407_v40, %v963_v25 }
0x1494   :  { %v1073_v41 = vpop.permute.xlu1 %1072 }
0x1495   :  { %v1075_v42 = vmul.f32 %v1407_v40, %v1073_v41 }
0x1497   :  { %1077 = vrot.lane.b32.xlu0 %v1075_v42, %s1418_s12 }
0x149b   :  { %261 = vrot.lane.b32.xlu0 %v1135_v43, %s1419_s17 }
0x1509   :  { %v1078_v45 = vpop.permute.xlu0 %1077 }
0x150a   :  { %v1080_v46 = vadd.f32 %v1078_v45, %v1070_v44 }
0x150c   :  { %1408 = vtanh.f32 %v1080_v46 }
0x150d   :  { %v262_v48 = vpop.permute.xlu0 %261 }
0x150e   :  { %v264_v49 = vmul.f32 %v262_v48, %v1522_v37  ;;  %v385_v50 = vmul.f32 %v1536_v59, %v262_v48  ;;  %v619_v57 = vmul.f32 %v1564_v35, %v262_v48  ;;  %v502_v58 = vmul.f32 %v1550_v17, %v262_v48 }
0x150f   :  { %v970_v37 = vmul.f32 %v969_v28, %v262_v48  ;;  %v736_v59 = vmul.f32 %v1577_v54, %v262_v48  ;;  %v853_v61 = vmul.f32 %v1590_v7, %v262_v48  ;;  %v274_v17 = vlaneseq }
0x1511   :  { %v275_v35 = vand.u32 127, %v274_v17  ;;  %v277_v63 = vshrl.u32 %v274_v17, 7 }
0x1513   :  { %v278_v0 = vsub.s32 %v275_v35, %v277_v63 }
0x1516   :  { %v1409_v47 = vpop.eup %1408 }
0x1517   :  { %1083 = vrot.lane.b32.xlu1 %v1409_v47, %s1417_s11 }
0x151b   :  { %266 = vrot.lane.b32.xlu1 %v264_v49, %s1418_s12 }
0x151f   :  { %387 = vrot.lane.b32.xlu1 %v385_v50, %s1418_s12 }
0x1589   :  { %v1084_v51 = vpop.permute.xlu1 %1083 }
0x158a   :  { %v1086_v60 = vmul.f32 %v1407_v40, %v1084_v51 }
0x158c   :  { %v1087_v62 = vmul.f32 %v1086_v60, %v262_v48 }
0x158d   :  { %v267_v52 = vpop.permute.xlu1 %266 }
0x158e   :  { %v270_v53 = vsel %vm28_vm2, %v267_v52, 0.0 }
0x158f   :  { %271 = vadd.xlane.f32.xlu0 %v270_v53 }
0x1591   :  { %v388_v55 = vpop.permute.xlu1 %387 }
0x1592   :  { %v390_v56 = vsel %vm28_vm2, %v388_v55, 0.0 }
0x1593   :  { %391 = vadd.xlane.f32.xlu1 %v390_v56 }
0x15a4   :  { %621 = vrot.lane.b32.xlu1 %v619_v57, %s1418_s12 }
0x15a5   :  { %504 = vrot.lane.b32.xlu0 %v502_v58, %s1418_s12 }
0x15a8   :  { %972 = vrot.lane.b32.xlu1 %v970_v37, %s1418_s12 }
0x15a9   :  { %738 = vrot.lane.b32.xlu0 %v736_v59, %s1418_s12 }
0x15ad   :  { %855 = vrot.lane.b32.xlu0 %v853_v61, %s1418_s12 }
0x15b1   :  { %1089 = vrot.lane.b32.xlu0 %v1087_v62, %s1418_s12 }
0x161c   :  { %v272_v8 = vpop.xlane.xlu0 %271 }
0x161d   :  { %v279_v1 = vrot.slane %v272_v8, %v278_v0 }
0x161f   :  { %282 = vst.msk [vmem:[#allocation5] sm:$0x1] %vm281_vm4, %v279_v1 }
0x1620   :  { %v505_v54 = vpop.permute.xlu0 %504  ;;  %v392_v4 = vpop.xlane.xlu1 %391 }
0x1621   :  { %v397_v3 = vrot.slane %v392_v4, %v278_v0  ;;  %v507_v10 = vsel %vm28_vm2, %v505_v54, 0.0 }
0x1622   :  { %508 = vadd.xlane.f32.xlu1 %v507_v10 }
0x1623   :  { %399 = vst.msk [vmem:[#allocation5 + $0x1] sm:$0x1] %vm281_vm4, %v397_v3 }
0x1624   :  { %v739_v2 = vpop.permute.xlu0 %738  ;;  %v622_v5 = vpop.permute.xlu1 %621 }
0x1625   :  { %v624_v6 = vsel %vm28_vm2, %v622_v5, 0.0  ;;  %v741_v11 = vsel %vm28_vm2, %v739_v2, 0.0 }
0x1626   :  { %625 = vadd.xlane.f32.xlu0 %v624_v6 }
0x1628   :  { %v856_v7 = vpop.permute.xlu0 %855  ;;  %v973_v12 = vpop.permute.xlu1 %972 }
0x1629   :  { %v858_v9 = vsel %vm28_vm2, %v856_v7, 0.0  ;;  %v975_v15 = vsel %vm28_vm2, %v973_v12, 0.0 }
0x162a   :  { %859 = vadd.xlane.f32.xlu1 %v858_v9  ;;  %742 = vadd.xlane.f32.xlu0 %v741_v11 }
0x162c   :  { %v1090_v13 = vpop.permute.xlu0 %1089 }
0x162d   :  { %v1092_v14 = vsel %vm28_vm2, %v1090_v13, 0.0 }
0x162e   :  { %1093 = vadd.xlane.f32.xlu1 %v1092_v14  ;;  %976 = vadd.xlane.f32.xlu0 %v975_v15 }
0x163f   :  { %1108 = vrot.lane.b32.xlu1 %v1080_v46, %s1419_s17 }
0x1644   :  { %1103 = vrot.lane.b32.xlu0 %v1086_v60, %s1418_s12 }
0x16af   :  { %v509_v16 = vpop.xlane.xlu1 %508 }
0x16b0   :  { %v514_v18 = vrot.slane %v509_v16, %v278_v0 }
0x16b2   :  { %516 = vst.msk [vmem:[#allocation5 + $0x2] sm:$0x1] %vm281_vm4, %v514_v18 }
0x16b3   :  { %v626_v19 = vpop.xlane.xlu0 %625 }
0x16b4   :  { %v631_v20 = vrot.slane %v626_v19, %v278_v0 }
0x16b6   :  { %633 = vst.msk [vmem:[#allocation5 + $0x3] sm:$0x1] %vm281_vm4, %v631_v20 }
0x16b7   :  { %v743_v21 = vpop.xlane.xlu0 %742  ;;  %v860_v22 = vpop.xlane.xlu1 %859 }
0x16b8   :  { %v748_v23 = vrot.slane %v743_v21, %v278_v0  ;;  %v865_v24 = vrot.slane %v860_v22, %v278_v0 }
0x16ba   :  { %750 = vst.msk [vmem:[#allocation5 + $0x4] sm:$0x1] %vm281_vm4, %v748_v23  ;;  %867 = vst.msk [vmem:[#allocation5 + $0x5] sm:$0x1] %vm281_vm4, %v865_v24 }
0x16bb   :  { %v977_v25 = vpop.xlane.xlu0 %976  ;;  %v1094_v26 = vpop.xlane.xlu1 %1093 }
0x16bc   :  { %v982_v27 = vrot.slane %v977_v25, %v278_v0  ;;  %v1099_v28 = vrot.slane %v1094_v26, %v278_v0 }
0x16be   :  { %984 = vst.msk [vmem:[#allocation5 + $0x6] sm:$0x1] %vm281_vm4, %v982_v27  ;;  %1101 = vst.msk [vmem:[#allocation5 + $0x7] sm:$0x1] %vm281_vm4, %v1099_v28 }
0x16bf   :  { %v1104_v29 = vpop.permute.xlu0 %1103  ;;  %v1109_v30 = vpop.permute.xlu1 %1108 }
0x16c0   :  { %1106 = vst.msk [vmem:[#allocation2] sm:$0xf] %vm28_vm2, %v1104_v29  ;;  %1111 = vst.msk [vmem:[#allocation3] sm:$0xf] %vm28_vm2, %v1109_v30 }
0x16c5   :  { %v1112_v32 = vld [vmem:[#allocation5] sm:$0xff] }
0x16c6   :  { %v1115_v33 = vadd.f32 %v1114_v31, %v1112_v32 }
0x16c8   :  { %v1150_v34 = vmul.f32 -1.442695, %v1115_v33 }
0x16ca   :  { %1410 = vpow2.f32 %v1150_v34 }
0x16d4   :  { %v1411_v36 = vpop.eup %1410 }
0x16d5   :  { %v1119_v38 = vadd.f32 1.0, %v1411_v36 }
0x16d7   :  { %1412 = vrcp.f32 %v1119_v38 }
0x16e1   :  { %v1413_v39 = vpop.eup %1412 }
0x16e2   :  { %1123 = vst.msk [vmem:[%s1653_s6] sm:$0xff] %vm1122_vm5, %v1413_v39 }

</bundles_post_ra>
